<compile_context>
chip_gen: v7x
topology: tpu7x:2x2x1
jax: 0.10.0
libtpu: 0.0.40
codegen_flags: <defaults>
</compile_context>

<pallas_src>
import itertools

import jax
import jax.numpy as jnp
import numpy as np
from jax.experimental import pallas as pl
from jax.experimental.pallas import tpu as pltpu

_VMEM = pl.BlockSpec(memory_space=pltpu.MemorySpace.VMEM)
_SMEM = pl.BlockSpec(memory_space=pltpu.MemorySpace.SMEM)
_BN_EPS = 1e-5
_LRELU_SLOPE = 0.01


# ------------------------- fused forward kernel -----------------------------

def _make_fused_forward(in_channels, latent_dim, n_dataset, hidden_dims, batch,
                        log_input=True):
    """Build a single pallas_call implementing the whole CoboltModel forward."""
    n_mod = len(in_channels)
    n_layers = len(hidden_dims)
    combos = [list(c) for c in itertools.product([False, True], repeat=n_mod)
              if sum(c) != 0]
    n_combos = len(combos)
    K = latent_dim
    inv_b = 1.0 / float(batch)

    def kernel(*refs):
        it = iter(refs)
        x_refs = [next(it) for _ in range(n_mod)]                      # (B, C_i)
        onehot_refs = [next(it) for _ in range(n_mod)]                 # (B, n_d_i)
        enc_refs = [[(next(it), next(it)) for _ in range(n_layers)]
                    for _ in range(n_mod)]                             # (in, h), (1, h)
        fc_refs = [(next(it), next(it)) for _ in range(n_mod)]         # (h, 2K), (1, 2K)
        beta_refs = [next(it) for _ in range(n_mod)]                   # (K, C_i)
        bdt_refs = [next(it) for _ in range(n_mod)]                    # (n_d_i, 2*C_i)
        mu2_ref = next(it)                                             # (1, K)
        var2_ref = next(it)                                            # (1, K)
        eps_ref = next(it)                                             # (n_combos, B, K)
        latent_o = next(it)                                            # (1, 1) SMEM
        recon_o = next(it)                                             # (1, 1) SMEM

        x_vals = [r[...] for r in x_refs]

        # ---- encoders: Linear -> BN(train, init) -> LeakyReLU, then fused
        #      fc_mu/fc_var; keep per-expert precision T and mu*T. ----
        T_all, muT_all = [], []
        for i in range(n_mod):
            h = jnp.log(x_vals[i] + 1.0) if log_input else x_vals[i]
            for (w_ref, b_ref) in enc_refs[i]:
                lin = jnp.dot(h, w_ref[...],
                              preferred_element_type=jnp.float32) + b_ref[...]
                mean = jnp.sum(lin, axis=0, keepdims=True) * inv_b
                var = jnp.sum(lin * lin, axis=0, keepdims=True) * inv_b - mean * mean
                hn = (lin - mean) * jax.lax.rsqrt(var + _BN_EPS)
                h = jnp.where(hn >= 0.0, hn, _LRELU_SLOPE * hn)
            wv_ref, bv_ref = fc_refs[i]
            mv = jnp.dot(h, wv_ref[...],
                         preferred_element_type=jnp.float32) + bv_ref[...]   # (B, 2K)
            mu_i = mv[:, :K]
            logvar_i = mv[:, K:]
            T_i = jnp.exp(-logvar_i)          # 1 / exp(log_var)
            T_all.append(T_i)
            muT_all.append(mu_i * T_i)

        mu2 = mu2_ref[...]                    # (1, K)
        var2 = var2_ref[...]                  # (1, K)
        inv_var2 = 1.0 / var2
        log_var2 = jnp.log(var2)
        T0 = inv_var2                         # prior expert precision
        muT0 = mu2 * T0

        # ---- dataset slope/intercept adjustments (combo independent) ----
        slopes_p1, intercepts = [], []
        for i in range(n_mod):
            adj = jnp.dot(onehot_refs[i][...], bdt_refs[i][...],
                          preferred_element_type=jnp.float32)       # (B, 2*C_i)
            C = in_channels[i]
            slopes_p1.append(adj[:, :C] + 1.0)    # beta_dataset_mtp part (+1)
            intercepts.append(adj[:, C:])         # beta_dataset part

        latent_acc = jnp.zeros((), jnp.float32)
        recon_acc = jnp.zeros((), jnp.float32)

        # ---- statically unrolled loop over elbo combinations ----
        for ci, flags in enumerate(combos):
            sum_T = T0
            sum_muT = muT0
            for i, f in enumerate(flags):
                if f:
                    sum_T = sum_T + T_all[i]
                    sum_muT = sum_muT + muT_all[i]
            pd_var = 1.0 / sum_T
            pd_mu = sum_muT * pd_var
            z = eps_ref[ci] * jnp.sqrt(pd_var) + pd_mu

            # latent (KL-like) loss — matches PyTorch reference exactly:
            # `- latent_dim` is subtracted per (B, K) element inside the sum.
            diff = mu2 - pd_mu
            latent_acc = latent_acc + 0.5 * jnp.sum(
                pd_var * inv_var2 + diff * inv_var2 * diff
                - float(latent_dim) + log_var2 - jnp.log(pd_var))

            # softmax over latent topics
            zc = z - jnp.max(z, axis=1, keepdims=True)
            ez = jnp.exp(zc)
            sz = ez / jnp.sum(ez, axis=1, keepdims=True)

            for i, f in enumerate(flags):
                if not f:
                    continue
                theta = jnp.dot(sz, beta_refs[i][...],
                                preferred_element_type=jnp.float32)   # (B, C_i)
                logits = theta * slopes_p1[i] + intercepts[i]
                lm = jnp.max(logits, axis=1, keepdims=True)
                sh = logits - lm
                log_sm = sh - jnp.log(jnp.sum(jnp.exp(sh), axis=1, keepdims=True))
                recon_acc = recon_acc - jnp.sum(x_vals[i] * log_sm)

        latent_o[0, 0] = latent_acc
        recon_o[0, 0] = recon_acc

    n_inputs = n_mod * (2 + 2 * n_layers + 2 + 1 + 1) + 3
    call = pl.pallas_call(
        kernel,
        out_shape=(jax.ShapeDtypeStruct((1, 1), jnp.float32),   # latent loss
                   jax.ShapeDtypeStruct((1, 1), jnp.float32)),  # recon loss
        in_specs=[_VMEM] * n_inputs,
        out_specs=(_SMEM, _SMEM),
    )
    return call, n_combos


# ------------------------------ parameters ----------------------------------

def xavier_init(key, fan_in, fan_out):
    bound = float(np.sqrt(6.0 / (fan_in + fan_out)))
    return jax.random.uniform(key, (fan_in, fan_out), jnp.float32, -bound, bound)


def torch_linear_init(key, fan_in, fan_out):
    kw, kb = jax.random.split(key)
    bound = float(1.0 / np.sqrt(fan_in))
    w = jax.random.uniform(kw, (fan_in, fan_out), jnp.float32, -bound, bound)
    b = jax.random.uniform(kb, (1, fan_out), jnp.float32, -bound, bound)
    return w, b


def init_params(key, in_channels, latent_dim, n_dataset, hidden_dims):
    n_keys = len(in_channels) * (len(hidden_dims) + 8)
    keys = iter(jax.random.split(key, n_keys))
    params = {'encoder': [], 'fc_muvar': [], 'beta': [], 'beta_dt_packed': []}
    for in_ch, n_d in zip(in_channels, n_dataset):
        layers = []
        cur = in_ch
        for h in hidden_dims:
            layers.append(torch_linear_init(next(keys), cur, h))
            cur = h
        params['encoder'].append(layers)
        # fc_mu / fc_var packed along the output axis: [hidden, 2*latent]
        w_mu, b_mu = torch_linear_init(next(keys), cur, latent_dim)
        w_var, b_var = torch_linear_init(next(keys), cur, latent_dim)
        params['fc_muvar'].append((jnp.concatenate([w_mu, w_var], axis=1),
                                   jnp.concatenate([b_mu, b_var], axis=1)))
        params['beta'].append(xavier_init(next(keys), latent_dim, in_ch))
        # beta_dataset_mtp (slope) first, then beta_dataset (intercept)
        bdt = xavier_init(next(keys), n_d, in_ch)
        bdt_mtp = jax.random.uniform(next(keys), (n_d, in_ch), jnp.float32, 0.0, 1.0)
        params['beta_dt_packed'].append(jnp.concatenate([bdt_mtp, bdt], axis=1))
    return params


# ------------------------------ forward pass --------------------------------

def cobolt_forward(params, x_list, dataset_list, mu2, var2, latent_dim, n_dataset,
                   hidden_dims, rng_key, log_input=True):
    in_channels = [int(x.shape[1]) for x in x_list]
    batch = int(x_list[0].shape[0])
    call, n_combos = _make_fused_forward(in_channels, latent_dim, n_dataset,
                                         hidden_dims, batch, log_input)
    # fac_to_mat == one-hot of the dataset factor
    onehots = [jax.nn.one_hot(d, n_d, dtype=jnp.float32)
               for d, n_d in zip(dataset_list, n_dataset)]
    # single RNG draw for all combinations (torch.randn_like per combination)
    eps = jax.random.normal(rng_key, (n_combos, batch, latent_dim), jnp.float32)

    args = []
    args += list(x_list)
    args += onehots
    for layers in params['encoder']:
        for (w, b) in layers:
            args += [w, b]
    for (w, b) in params['fc_muvar']:
        args += [w, b]
    args += list(params['beta'])
    args += list(params['beta_dt_packed'])
    args += [mu2, var2, eps]

    latent_o, recon_o = call(*args)
    return latent_o[0, 0], recon_o[0, 0]


# ---------------------------------- main -------------------------------------

if __name__ == "__main__":
    key = jax.random.PRNGKey(0)

    batch = 8
    in_channels = [32, 16]
    latent_dim = 16
    n_dataset = [4, 2]
    hidden_dims = [32, 16]
    alpha = 50.0 / latent_dim

    # Dirichlet-approximation prior (mu2, var2), as in CoboltModel.__init__.
    a = alpha * jnp.ones((1, latent_dim), jnp.float32)
    mu2 = jnp.log(a) - jnp.mean(jnp.log(a), axis=1)
    var2 = (1.0 / a) * (1.0 - 2.0 / latent_dim) \
        + (1.0 / (latent_dim * latent_dim)) * jnp.sum(1.0 / a, axis=1)

    kp, kx0, kx1, kd0, kd1, keps = jax.random.split(key, 6)
    params = init_params(kp, in_channels, latent_dim, n_dataset, hidden_dims)

    x_list = [
        jax.random.uniform(kx0, (batch, in_channels[0]), jnp.float32, 0.0, 5.0),
        jax.random.uniform(kx1, (batch, in_channels[1]), jnp.float32, 0.0, 5.0),
    ]
    dataset_list = [
        jax.random.randint(kd0, (batch,), 0, n_dataset[0]),
        jax.random.randint(kd1, (batch,), 0, n_dataset[1]),
    ]

    latent_loss, recon_loss = cobolt_forward(
        params, x_list, dataset_list, mu2, var2, latent_dim, n_dataset,
        hidden_dims, keps)
    jax.block_until_ready((latent_loss, recon_loss))
    print("KERNEL_OK")
</pallas_src>

<mosaic_0001>
module attributes {stable_mosaic.version = 11 : i64} {
  func.func @kernel(%arg0: memref<8x32xf32, #tpu.memory_space<vmem>>, %arg1: memref<8x16xf32, #tpu.memory_space<vmem>>, %arg2: memref<8x4xf32, #tpu.memory_space<vmem>>, %arg3: memref<8x2xf32, #tpu.memory_space<vmem>>, %arg4: memref<32x32xf32, #tpu.memory_space<vmem>>, %arg5: memref<1x32xf32, #tpu.memory_space<vmem>>, %arg6: memref<32x16xf32, #tpu.memory_space<vmem>>, %arg7: memref<1x16xf32, #tpu.memory_space<vmem>>, %arg8: memref<16x32xf32, #tpu.memory_space<vmem>>, %arg9: memref<1x32xf32, #tpu.memory_space<vmem>>, %arg10: memref<32x16xf32, #tpu.memory_space<vmem>>, %arg11: memref<1x16xf32, #tpu.memory_space<vmem>>, %arg12: memref<16x32xf32, #tpu.memory_space<vmem>>, %arg13: memref<1x32xf32, #tpu.memory_space<vmem>>, %arg14: memref<16x32xf32, #tpu.memory_space<vmem>>, %arg15: memref<1x32xf32, #tpu.memory_space<vmem>>, %arg16: memref<16x32xf32, #tpu.memory_space<vmem>>, %arg17: memref<16x16xf32, #tpu.memory_space<vmem>>, %arg18: memref<4x64xf32, #tpu.memory_space<vmem>>, %arg19: memref<2x32xf32, #tpu.memory_space<vmem>>, %arg20: memref<1x16xf32, #tpu.memory_space<vmem>>, %arg21: memref<1x16xf32, #tpu.memory_space<vmem>>, %arg22: memref<3x8x16xf32, #tpu.memory_space<vmem>>, %arg23: memref<1x1xf32, #tpu.memory_space<smem>>, %arg24: memref<1x1xf32, #tpu.memory_space<smem>>) attributes {dimension_semantics = [], scalar_prefetch = 0 : i64, scratch_operands = 0 : i64, tpu.core_type = #tpu.core_type<tc>} {
    %c0 = arith.constant 0 : index
    %c0_0 = arith.constant 0 : index
    %0 = vector.load %arg0[%c0, %c0_0] : memref<8x32xf32, #tpu.memory_space<vmem>>, vector<8x32xf32>
    %c0_1 = arith.constant 0 : index
    %c0_2 = arith.constant 0 : index
    %1 = vector.load %arg1[%c0_1, %c0_2] : memref<8x16xf32, #tpu.memory_space<vmem>>, vector<8x16xf32>
    %cst = arith.constant 1.000000e+00 : f32
    %2 = vector.broadcast %cst : f32 to vector<8x32xf32>
    %3 = arith.addf %0, %2 : vector<8x32xf32>
    %4 = math.log %3 : vector<8x32xf32>
    %c0_3 = arith.constant 0 : index
    %c0_4 = arith.constant 0 : index
    %5 = vector.load %arg4[%c0_3, %c0_4] : memref<32x32xf32, #tpu.memory_space<vmem>>, vector<32x32xf32>
    %cst_5 = arith.constant dense<0.000000e+00> : vector<8x32xf32>
    %6 = tpu.matmul %4, %5, %cst_5 {dimension_numbers = #tpu.dot_dimension_numbers<[1], [0], [0], [1], [0, 0, 1, 1], [], []>} : vector<8x32xf32>, vector<32x32xf32>, vector<8x32xf32> -> vector<8x32xf32>
    %c0_6 = arith.constant 0 : index
    %c0_7 = arith.constant 0 : index
    %7 = vector.load %arg5[%c0_6, %c0_7] : memref<1x32xf32, #tpu.memory_space<vmem>>, vector<1x32xf32>
    %8 = vector.broadcast %7 : vector<1x32xf32> to vector<8x32xf32>
    %9 = arith.addf %6, %8 : vector<8x32xf32>
    %cst_8 = arith.constant dense<0.000000e+00> : vector<32xf32>
    %10 = vector.multi_reduction <add>, %9, %cst_8 [0] : vector<8x32xf32> to vector<32xf32>
    %11 = vector.shape_cast %10 : vector<32xf32> to vector<1x32xf32>
    %cst_9 = arith.constant 1.250000e-01 : f32
    %12 = vector.broadcast %cst_9 : f32 to vector<1x32xf32>
    %13 = arith.mulf %11, %12 : vector<1x32xf32>
    %14 = arith.mulf %9, %9 : vector<8x32xf32>
    %cst_10 = arith.constant dense<0.000000e+00> : vector<32xf32>
    %15 = vector.multi_reduction <add>, %14, %cst_10 [0] : vector<8x32xf32> to vector<32xf32>
    %16 = vector.shape_cast %15 : vector<32xf32> to vector<1x32xf32>
    %cst_11 = arith.constant 1.250000e-01 : f32
    %17 = vector.broadcast %cst_11 : f32 to vector<1x32xf32>
    %18 = arith.mulf %16, %17 : vector<1x32xf32>
    %19 = arith.mulf %13, %13 : vector<1x32xf32>
    %20 = arith.subf %18, %19 : vector<1x32xf32>
    %21 = vector.broadcast %13 : vector<1x32xf32> to vector<8x32xf32>
    %22 = arith.subf %9, %21 : vector<8x32xf32>
    %cst_12 = arith.constant 9.99999974E-6 : f32
    %23 = vector.broadcast %cst_12 : f32 to vector<1x32xf32>
    %24 = arith.addf %20, %23 : vector<1x32xf32>
    %25 = math.rsqrt %24 : vector<1x32xf32>
    %26 = vector.broadcast %25 : vector<1x32xf32> to vector<8x32xf32>
    %27 = arith.mulf %22, %26 : vector<8x32xf32>
    %cst_13 = arith.constant 0.000000e+00 : f32
    %28 = vector.broadcast %cst_13 : f32 to vector<8x32xf32>
    %29 = arith.cmpf oge, %27, %28 : vector<8x32xf32>
    %cst_14 = arith.constant 0.00999999977 : f32
    %30 = vector.broadcast %cst_14 : f32 to vector<8x32xf32>
    %31 = arith.mulf %30, %27 : vector<8x32xf32>
    %32 = arith.select %29, %27, %31 : vector<8x32xi1>, vector<8x32xf32>
    %c0_15 = arith.constant 0 : index
    %c0_16 = arith.constant 0 : index
    %33 = vector.load %arg6[%c0_15, %c0_16] : memref<32x16xf32, #tpu.memory_space<vmem>>, vector<32x16xf32>
    %cst_17 = arith.constant dense<0.000000e+00> : vector<8x16xf32>
    %34 = tpu.matmul %32, %33, %cst_17 {dimension_numbers = #tpu.dot_dimension_numbers<[1], [0], [0], [1], [0, 0, 1, 1], [], []>} : vector<8x32xf32>, vector<32x16xf32>, vector<8x16xf32> -> vector<8x16xf32>
    %c0_18 = arith.constant 0 : index
    %c0_19 = arith.constant 0 : index
    %35 = vector.load %arg7[%c0_18, %c0_19] : memref<1x16xf32, #tpu.memory_space<vmem>>, vector<1x16xf32>
    %36 = vector.broadcast %35 : vector<1x16xf32> to vector<8x16xf32>
    %37 = arith.addf %34, %36 : vector<8x16xf32>
    %cst_20 = arith.constant dense<0.000000e+00> : vector<16xf32>
    %38 = vector.multi_reduction <add>, %37, %cst_20 [0] : vector<8x16xf32> to vector<16xf32>
    %39 = vector.shape_cast %38 : vector<16xf32> to vector<1x16xf32>
    %cst_21 = arith.constant 1.250000e-01 : f32
    %40 = vector.broadcast %cst_21 : f32 to vector<1x16xf32>
    %41 = arith.mulf %39, %40 : vector<1x16xf32>
    %42 = arith.mulf %37, %37 : vector<8x16xf32>
    %cst_22 = arith.constant dense<0.000000e+00> : vector<16xf32>
    %43 = vector.multi_reduction <add>, %42, %cst_22 [0] : vector<8x16xf32> to vector<16xf32>
    %44 = vector.shape_cast %43 : vector<16xf32> to vector<1x16xf32>
    %cst_23 = arith.constant 1.250000e-01 : f32
    %45 = vector.broadcast %cst_23 : f32 to vector<1x16xf32>
    %46 = arith.mulf %44, %45 : vector<1x16xf32>
    %47 = arith.mulf %41, %41 : vector<1x16xf32>
    %48 = arith.subf %46, %47 : vector<1x16xf32>
    %49 = vector.broadcast %41 : vector<1x16xf32> to vector<8x16xf32>
    %50 = arith.subf %37, %49 : vector<8x16xf32>
    %cst_24 = arith.constant 9.99999974E-6 : f32
    %51 = vector.broadcast %cst_24 : f32 to vector<1x16xf32>
    %52 = arith.addf %48, %51 : vector<1x16xf32>
    %53 = math.rsqrt %52 : vector<1x16xf32>
    %54 = vector.broadcast %53 : vector<1x16xf32> to vector<8x16xf32>
    %55 = arith.mulf %50, %54 : vector<8x16xf32>
    %cst_25 = arith.constant 0.000000e+00 : f32
    %56 = vector.broadcast %cst_25 : f32 to vector<8x16xf32>
    %57 = arith.cmpf oge, %55, %56 : vector<8x16xf32>
    %cst_26 = arith.constant 0.00999999977 : f32
    %58 = vector.broadcast %cst_26 : f32 to vector<8x16xf32>
    %59 = arith.mulf %58, %55 : vector<8x16xf32>
    %60 = arith.select %57, %55, %59 : vector<8x16xi1>, vector<8x16xf32>
    %c0_27 = arith.constant 0 : index
    %c0_28 = arith.constant 0 : index
    %61 = vector.load %arg12[%c0_27, %c0_28] : memref<16x32xf32, #tpu.memory_space<vmem>>, vector<16x32xf32>
    %cst_29 = arith.constant dense<0.000000e+00> : vector<8x32xf32>
    %62 = tpu.matmul %60, %61, %cst_29 {dimension_numbers = #tpu.dot_dimension_numbers<[1], [0], [0], [1], [0, 0, 1, 1], [], []>} : vector<8x16xf32>, vector<16x32xf32>, vector<8x32xf32> -> vector<8x32xf32>
    %c0_30 = arith.constant 0 : index
    %c0_31 = arith.constant 0 : index
    %63 = vector.load %arg13[%c0_30, %c0_31] : memref<1x32xf32, #tpu.memory_space<vmem>>, vector<1x32xf32>
    %64 = vector.broadcast %63 : vector<1x32xf32> to vector<8x32xf32>
    %65 = arith.addf %62, %64 : vector<8x32xf32>
    %66 = vector.extract_strided_slice %65 {offsets = [0, 0], sizes = [8, 16], strides = [1, 1]} : vector<8x32xf32> to vector<8x16xf32>
    %67 = vector.extract_strided_slice %65 {offsets = [0, 16], sizes = [8, 16], strides = [1, 1]} : vector<8x32xf32> to vector<8x16xf32>
    %cst_32 = arith.constant 0.000000e+00 : f32
    %68 = vector.broadcast %cst_32 : f32 to vector<8x16xf32>
    %69 = arith.subf %68, %67 : vector<8x16xf32>
    %70 = math.exp %69 : vector<8x16xf32>
    %71 = arith.mulf %66, %70 : vector<8x16xf32>
    %cst_33 = arith.constant 1.000000e+00 : f32
    %72 = vector.broadcast %cst_33 : f32 to vector<8x16xf32>
    %73 = arith.addf %1, %72 : vector<8x16xf32>
    %74 = math.log %73 : vector<8x16xf32>
    %c0_34 = arith.constant 0 : index
    %c0_35 = arith.constant 0 : index
    %75 = vector.load %arg8[%c0_34, %c0_35] : memref<16x32xf32, #tpu.memory_space<vmem>>, vector<16x32xf32>
    %cst_36 = arith.constant dense<0.000000e+00> : vector<8x32xf32>
    %76 = tpu.matmul %74, %75, %cst_36 {dimension_numbers = #tpu.dot_dimension_numbers<[1], [0], [0], [1], [0, 0, 1, 1], [], []>} : vector<8x16xf32>, vector<16x32xf32>, vector<8x32xf32> -> vector<8x32xf32>
    %c0_37 = arith.constant 0 : index
    %c0_38 = arith.constant 0 : index
    %77 = vector.load %arg9[%c0_37, %c0_38] : memref<1x32xf32, #tpu.memory_space<vmem>>, vector<1x32xf32>
    %78 = vector.broadcast %77 : vector<1x32xf32> to vector<8x32xf32>
    %79 = arith.addf %76, %78 : vector<8x32xf32>
    %cst_39 = arith.constant dense<0.000000e+00> : vector<32xf32>
    %80 = vector.multi_reduction <add>, %79, %cst_39 [0] : vector<8x32xf32> to vector<32xf32>
    %81 = vector.shape_cast %80 : vector<32xf32> to vector<1x32xf32>
    %cst_40 = arith.constant 1.250000e-01 : f32
    %82 = vector.broadcast %cst_40 : f32 to vector<1x32xf32>
    %83 = arith.mulf %81, %82 : vector<1x32xf32>
    %84 = arith.mulf %79, %79 : vector<8x32xf32>
    %cst_41 = arith.constant dense<0.000000e+00> : vector<32xf32>
    %85 = vector.multi_reduction <add>, %84, %cst_41 [0] : vector<8x32xf32> to vector<32xf32>
    %86 = vector.shape_cast %85 : vector<32xf32> to vector<1x32xf32>
    %cst_42 = arith.constant 1.250000e-01 : f32
    %87 = vector.broadcast %cst_42 : f32 to vector<1x32xf32>
    %88 = arith.mulf %86, %87 : vector<1x32xf32>
    %89 = arith.mulf %83, %83 : vector<1x32xf32>
    %90 = arith.subf %88, %89 : vector<1x32xf32>
    %91 = vector.broadcast %83 : vector<1x32xf32> to vector<8x32xf32>
    %92 = arith.subf %79, %91 : vector<8x32xf32>
    %cst_43 = arith.constant 9.99999974E-6 : f32
    %93 = vector.broadcast %cst_43 : f32 to vector<1x32xf32>
    %94 = arith.addf %90, %93 : vector<1x32xf32>
    %95 = math.rsqrt %94 : vector<1x32xf32>
    %96 = vector.broadcast %95 : vector<1x32xf32> to vector<8x32xf32>
    %97 = arith.mulf %92, %96 : vector<8x32xf32>
    %cst_44 = arith.constant 0.000000e+00 : f32
    %98 = vector.broadcast %cst_44 : f32 to vector<8x32xf32>
    %99 = arith.cmpf oge, %97, %98 : vector<8x32xf32>
    %cst_45 = arith.constant 0.00999999977 : f32
    %100 = vector.broadcast %cst_45 : f32 to vector<8x32xf32>
    %101 = arith.mulf %100, %97 : vector<8x32xf32>
    %102 = arith.select %99, %97, %101 : vector<8x32xi1>, vector<8x32xf32>
    %c0_46 = arith.constant 0 : index
    %c0_47 = arith.constant 0 : index
    %103 = vector.load %arg10[%c0_46, %c0_47] : memref<32x16xf32, #tpu.memory_space<vmem>>, vector<32x16xf32>
    %cst_48 = arith.constant dense<0.000000e+00> : vector<8x16xf32>
    %104 = tpu.matmul %102, %103, %cst_48 {dimension_numbers = #tpu.dot_dimension_numbers<[1], [0], [0], [1], [0, 0, 1, 1], [], []>} : vector<8x32xf32>, vector<32x16xf32>, vector<8x16xf32> -> vector<8x16xf32>
    %c0_49 = arith.constant 0 : index
    %c0_50 = arith.constant 0 : index
    %105 = vector.load %arg11[%c0_49, %c0_50] : memref<1x16xf32, #tpu.memory_space<vmem>>, vector<1x16xf32>
    %106 = vector.broadcast %105 : vector<1x16xf32> to vector<8x16xf32>
    %107 = arith.addf %104, %106 : vector<8x16xf32>
    %cst_51 = arith.constant dense<0.000000e+00> : vector<16xf32>
    %108 = vector.multi_reduction <add>, %107, %cst_51 [0] : vector<8x16xf32> to vector<16xf32>
    %109 = vector.shape_cast %108 : vector<16xf32> to vector<1x16xf32>
    %cst_52 = arith.constant 1.250000e-01 : f32
    %110 = vector.broadcast %cst_52 : f32 to vector<1x16xf32>
    %111 = arith.mulf %109, %110 : vector<1x16xf32>
    %112 = arith.mulf %107, %107 : vector<8x16xf32>
    %cst_53 = arith.constant dense<0.000000e+00> : vector<16xf32>
    %113 = vector.multi_reduction <add>, %112, %cst_53 [0] : vector<8x16xf32> to vector<16xf32>
    %114 = vector.shape_cast %113 : vector<16xf32> to vector<1x16xf32>
    %cst_54 = arith.constant 1.250000e-01 : f32
    %115 = vector.broadcast %cst_54 : f32 to vector<1x16xf32>
    %116 = arith.mulf %114, %115 : vector<1x16xf32>
    %117 = arith.mulf %111, %111 : vector<1x16xf32>
    %118 = arith.subf %116, %117 : vector<1x16xf32>
    %119 = vector.broadcast %111 : vector<1x16xf32> to vector<8x16xf32>
    %120 = arith.subf %107, %119 : vector<8x16xf32>
    %cst_55 = arith.constant 9.99999974E-6 : f32
    %121 = vector.broadcast %cst_55 : f32 to vector<1x16xf32>
    %122 = arith.addf %118, %121 : vector<1x16xf32>
    %123 = math.rsqrt %122 : vector<1x16xf32>
    %124 = vector.broadcast %123 : vector<1x16xf32> to vector<8x16xf32>
    %125 = arith.mulf %120, %124 : vector<8x16xf32>
    %cst_56 = arith.constant 0.000000e+00 : f32
    %126 = vector.broadcast %cst_56 : f32 to vector<8x16xf32>
    %127 = arith.cmpf oge, %125, %126 : vector<8x16xf32>
    %cst_57 = arith.constant 0.00999999977 : f32
    %128 = vector.broadcast %cst_57 : f32 to vector<8x16xf32>
    %129 = arith.mulf %128, %125 : vector<8x16xf32>
    %130 = arith.select %127, %125, %129 : vector<8x16xi1>, vector<8x16xf32>
    %c0_58 = arith.constant 0 : index
    %c0_59 = arith.constant 0 : index
    %131 = vector.load %arg14[%c0_58, %c0_59] : memref<16x32xf32, #tpu.memory_space<vmem>>, vector<16x32xf32>
    %cst_60 = arith.constant dense<0.000000e+00> : vector<8x32xf32>
    %132 = tpu.matmul %130, %131, %cst_60 {dimension_numbers = #tpu.dot_dimension_numbers<[1], [0], [0], [1], [0, 0, 1, 1], [], []>} : vector<8x16xf32>, vector<16x32xf32>, vector<8x32xf32> -> vector<8x32xf32>
    %c0_61 = arith.constant 0 : index
    %c0_62 = arith.constant 0 : index
    %133 = vector.load %arg15[%c0_61, %c0_62] : memref<1x32xf32, #tpu.memory_space<vmem>>, vector<1x32xf32>
    %134 = vector.broadcast %133 : vector<1x32xf32> to vector<8x32xf32>
    %135 = arith.addf %132, %134 : vector<8x32xf32>
    %136 = vector.extract_strided_slice %135 {offsets = [0, 0], sizes = [8, 16], strides = [1, 1]} : vector<8x32xf32> to vector<8x16xf32>
    %137 = vector.extract_strided_slice %135 {offsets = [0, 16], sizes = [8, 16], strides = [1, 1]} : vector<8x32xf32> to vector<8x16xf32>
    %cst_63 = arith.constant 0.000000e+00 : f32
    %138 = vector.broadcast %cst_63 : f32 to vector<8x16xf32>
    %139 = arith.subf %138, %137 : vector<8x16xf32>
    %140 = math.exp %139 : vector<8x16xf32>
    %141 = arith.mulf %136, %140 : vector<8x16xf32>
    %c0_64 = arith.constant 0 : index
    %c0_65 = arith.constant 0 : index
    %142 = vector.load %arg20[%c0_64, %c0_65] : memref<1x16xf32, #tpu.memory_space<vmem>>, vector<1x16xf32>
    %c0_66 = arith.constant 0 : index
    %c0_67 = arith.constant 0 : index
    %143 = vector.load %arg21[%c0_66, %c0_67] : memref<1x16xf32, #tpu.memory_space<vmem>>, vector<1x16xf32>
    %cst_68 = arith.constant 1.000000e+00 : f32
    %144 = vector.broadcast %cst_68 : f32 to vector<1x16xf32>
    %145 = arith.divf %144, %143 : vector<1x16xf32>
    %146 = math.log %143 : vector<1x16xf32>
    %147 = arith.mulf %142, %145 : vector<1x16xf32>
    %c0_69 = arith.constant 0 : index
    %c0_70 = arith.constant 0 : index
    %148 = vector.load %arg2[%c0_69, %c0_70] : memref<8x4xf32, #tpu.memory_space<vmem>>, vector<8x4xf32>
    %c0_71 = arith.constant 0 : index
    %c0_72 = arith.constant 0 : index
    %149 = vector.load %arg18[%c0_71, %c0_72] : memref<4x64xf32, #tpu.memory_space<vmem>>, vector<4x64xf32>
    %cst_73 = arith.constant dense<0.000000e+00> : vector<8x64xf32>
    %150 = tpu.matmul %148, %149, %cst_73 {dimension_numbers = #tpu.dot_dimension_numbers<[1], [0], [0], [1], [0, 0, 1, 1], [], []>} : vector<8x4xf32>, vector<4x64xf32>, vector<8x64xf32> -> vector<8x64xf32>
    %151 = vector.extract_strided_slice %150 {offsets = [0, 0], sizes = [8, 32], strides = [1, 1]} : vector<8x64xf32> to vector<8x32xf32>
    %cst_74 = arith.constant 1.000000e+00 : f32
    %152 = vector.broadcast %cst_74 : f32 to vector<8x32xf32>
    %153 = arith.addf %151, %152 : vector<8x32xf32>
    %154 = vector.extract_strided_slice %150 {offsets = [0, 32], sizes = [8, 32], strides = [1, 1]} : vector<8x64xf32> to vector<8x32xf32>
    %c0_75 = arith.constant 0 : index
    %c0_76 = arith.constant 0 : index
    %155 = vector.load %arg3[%c0_75, %c0_76] : memref<8x2xf32, #tpu.memory_space<vmem>>, vector<8x2xf32>
    %c0_77 = arith.constant 0 : index
    %c0_78 = arith.constant 0 : index
    %156 = vector.load %arg19[%c0_77, %c0_78] : memref<2x32xf32, #tpu.memory_space<vmem>>, vector<2x32xf32>
    %cst_79 = arith.constant dense<0.000000e+00> : vector<8x32xf32>
    %157 = tpu.matmul %155, %156, %cst_79 {dimension_numbers = #tpu.dot_dimension_numbers<[1], [0], [0], [1], [0, 0, 1, 1], [], []>} : vector<8x2xf32>, vector<2x32xf32>, vector<8x32xf32> -> vector<8x32xf32>
    %158 = vector.extract_strided_slice %157 {offsets = [0, 0], sizes = [8, 16], strides = [1, 1]} : vector<8x32xf32> to vector<8x16xf32>
    %cst_80 = arith.constant 1.000000e+00 : f32
    %159 = vector.broadcast %cst_80 : f32 to vector<8x16xf32>
    %160 = arith.addf %158, %159 : vector<8x16xf32>
    %161 = vector.extract_strided_slice %157 {offsets = [0, 16], sizes = [8, 16], strides = [1, 1]} : vector<8x32xf32> to vector<8x16xf32>
    %162 = vector.broadcast %145 : vector<1x16xf32> to vector<8x16xf32>
    %163 = arith.addf %162, %140 : vector<8x16xf32>
    %164 = vector.broadcast %147 : vector<1x16xf32> to vector<8x16xf32>
    %165 = arith.addf %164, %141 : vector<8x16xf32>
    %cst_81 = arith.constant 1.000000e+00 : f32
    %166 = vector.broadcast %cst_81 : f32 to vector<8x16xf32>
    %167 = arith.divf %166, %163 : vector<8x16xf32>
    %168 = arith.mulf %165, %167 : vector<8x16xf32>
    %c0_82 = arith.constant 0 : index
    %c0_83 = arith.constant 0 : index
    %c0_84 = arith.constant 0 : index
    %169 = vector.load %arg22[%c0_82, %c0_83, %c0_84] : memref<3x8x16xf32, #tpu.memory_space<vmem>>, vector<1x8x16xf32>
    %170 = vector.shape_cast %169 : vector<1x8x16xf32> to vector<8x16xf32>
    %171 = math.sqrt %167 : vector<8x16xf32>
    %172 = arith.mulf %170, %171 : vector<8x16xf32>
    %173 = arith.addf %172, %168 : vector<8x16xf32>
    %174 = vector.broadcast %142 : vector<1x16xf32> to vector<8x16xf32>
    %175 = arith.subf %174, %168 : vector<8x16xf32>
    %176 = vector.broadcast %145 : vector<1x16xf32> to vector<8x16xf32>
    %177 = arith.mulf %167, %176 : vector<8x16xf32>
    %178 = vector.broadcast %145 : vector<1x16xf32> to vector<8x16xf32>
    %179 = arith.mulf %175, %178 : vector<8x16xf32>
    %180 = arith.mulf %179, %175 : vector<8x16xf32>
    %181 = arith.addf %177, %180 : vector<8x16xf32>
    %cst_85 = arith.constant 1.600000e+01 : f32
    %182 = vector.broadcast %cst_85 : f32 to vector<8x16xf32>
    %183 = arith.subf %181, %182 : vector<8x16xf32>
    %184 = vector.broadcast %146 : vector<1x16xf32> to vector<8x16xf32>
    %185 = arith.addf %183, %184 : vector<8x16xf32>
    %186 = math.log %167 : vector<8x16xf32>
    %187 = arith.subf %185, %186 : vector<8x16xf32>
    %188 = vector.shape_cast %187 : vector<8x16xf32> to vector<1x8x16xf32>
    %cst_86 = arith.constant dense<0.000000e+00> : vector<1xf32>
    %189 = vector.multi_reduction <add>, %188, %cst_86 [1, 2] : vector<1x8x16xf32> to vector<1xf32>
    %190 = vector.shape_cast %189 : vector<1xf32> to vector<1x1x1xf32>
    %191 = vector.extract %190[0, 0, 0] : f32 from vector<1x1x1xf32>
    %cst_87 = arith.constant 5.000000e-01 : f32
    %192 = arith.mulf %cst_87, %191 : f32
    %cst_88 = arith.constant 0.000000e+00 : f32
    %193 = arith.addf %cst_88, %192 : f32
    %cst_89 = arith.constant dense<0xFF800000> : vector<8xf32>
    %194 = vector.multi_reduction <maximumf>, %173, %cst_89 [1] : vector<8x16xf32> to vector<8xf32>
    %195 = vector.shape_cast %194 : vector<8xf32> to vector<8x1xf32>
    %196 = vector.broadcast %195 : vector<8x1xf32> to vector<8x16xf32>
    %197 = arith.subf %173, %196 : vector<8x16xf32>
    %198 = math.exp %197 : vector<8x16xf32>
    %cst_90 = arith.constant dense<0.000000e+00> : vector<8xf32>
    %199 = vector.multi_reduction <add>, %198, %cst_90 [1] : vector<8x16xf32> to vector<8xf32>
    %200 = vector.shape_cast %199 : vector<8xf32> to vector<8x1xf32>
    %201 = vector.broadcast %200 : vector<8x1xf32> to vector<8x16xf32>
    %202 = arith.divf %198, %201 : vector<8x16xf32>
    %c0_91 = arith.constant 0 : index
    %c0_92 = arith.constant 0 : index
    %203 = vector.load %arg17[%c0_91, %c0_92] : memref<16x16xf32, #tpu.memory_space<vmem>>, vector<16x16xf32>
    %cst_93 = arith.constant dense<0.000000e+00> : vector<8x16xf32>
    %204 = tpu.matmul %202, %203, %cst_93 {dimension_numbers = #tpu.dot_dimension_numbers<[1], [0], [0], [1], [0, 0, 1, 1], [], []>} : vector<8x16xf32>, vector<16x16xf32>, vector<8x16xf32> -> vector<8x16xf32>
    %205 = arith.mulf %204, %160 : vector<8x16xf32>
    %206 = arith.addf %205, %161 : vector<8x16xf32>
    %cst_94 = arith.constant dense<0xFF800000> : vector<8xf32>
    %207 = vector.multi_reduction <maximumf>, %206, %cst_94 [1] : vector<8x16xf32> to vector<8xf32>
    %208 = vector.shape_cast %207 : vector<8xf32> to vector<8x1xf32>
    %209 = vector.broadcast %208 : vector<8x1xf32> to vector<8x16xf32>
    %210 = arith.subf %206, %209 : vector<8x16xf32>
    %211 = math.exp %210 : vector<8x16xf32>
    %cst_95 = arith.constant dense<0.000000e+00> : vector<8xf32>
    %212 = vector.multi_reduction <add>, %211, %cst_95 [1] : vector<8x16xf32> to vector<8xf32>
    %213 = vector.shape_cast %212 : vector<8xf32> to vector<8x1xf32>
    %214 = math.log %213 : vector<8x1xf32>
    %215 = vector.broadcast %214 : vector<8x1xf32> to vector<8x16xf32>
    %216 = arith.subf %210, %215 : vector<8x16xf32>
    %217 = arith.mulf %1, %216 : vector<8x16xf32>
    %218 = vector.shape_cast %217 : vector<8x16xf32> to vector<1x8x16xf32>
    %cst_96 = arith.constant dense<0.000000e+00> : vector<1xf32>
    %219 = vector.multi_reduction <add>, %218, %cst_96 [1, 2] : vector<1x8x16xf32> to vector<1xf32>
    %220 = vector.shape_cast %219 : vector<1xf32> to vector<1x1x1xf32>
    %221 = vector.extract %220[0, 0, 0] : f32 from vector<1x1x1xf32>
    %cst_97 = arith.constant 0.000000e+00 : f32
    %222 = arith.subf %cst_97, %221 : f32
    %223 = vector.broadcast %145 : vector<1x16xf32> to vector<8x16xf32>
    %224 = arith.addf %223, %70 : vector<8x16xf32>
    %225 = vector.broadcast %147 : vector<1x16xf32> to vector<8x16xf32>
    %226 = arith.addf %225, %71 : vector<8x16xf32>
    %cst_98 = arith.constant 1.000000e+00 : f32
    %227 = vector.broadcast %cst_98 : f32 to vector<8x16xf32>
    %228 = arith.divf %227, %224 : vector<8x16xf32>
    %229 = arith.mulf %226, %228 : vector<8x16xf32>
    %c1 = arith.constant 1 : index
    %c0_99 = arith.constant 0 : index
    %c0_100 = arith.constant 0 : index
    %230 = vector.load %arg22[%c1, %c0_99, %c0_100] : memref<3x8x16xf32, #tpu.memory_space<vmem>>, vector<1x8x16xf32>
    %231 = vector.shape_cast %230 : vector<1x8x16xf32> to vector<8x16xf32>
    %232 = math.sqrt %228 : vector<8x16xf32>
    %233 = arith.mulf %231, %232 : vector<8x16xf32>
    %234 = arith.addf %233, %229 : vector<8x16xf32>
    %235 = vector.broadcast %142 : vector<1x16xf32> to vector<8x16xf32>
    %236 = arith.subf %235, %229 : vector<8x16xf32>
    %237 = vector.broadcast %145 : vector<1x16xf32> to vector<8x16xf32>
    %238 = arith.mulf %228, %237 : vector<8x16xf32>
    %239 = vector.broadcast %145 : vector<1x16xf32> to vector<8x16xf32>
    %240 = arith.mulf %236, %239 : vector<8x16xf32>
    %241 = arith.mulf %240, %236 : vector<8x16xf32>
    %242 = arith.addf %238, %241 : vector<8x16xf32>
    %cst_101 = arith.constant 1.600000e+01 : f32
    %243 = vector.broadcast %cst_101 : f32 to vector<8x16xf32>
    %244 = arith.subf %242, %243 : vector<8x16xf32>
    %245 = vector.broadcast %146 : vector<1x16xf32> to vector<8x16xf32>
    %246 = arith.addf %244, %245 : vector<8x16xf32>
    %247 = math.log %228 : vector<8x16xf32>
    %248 = arith.subf %246, %247 : vector<8x16xf32>
    %249 = vector.shape_cast %248 : vector<8x16xf32> to vector<1x8x16xf32>
    %cst_102 = arith.constant dense<0.000000e+00> : vector<1xf32>
    %250 = vector.multi_reduction <add>, %249, %cst_102 [1, 2] : vector<1x8x16xf32> to vector<1xf32>
    %251 = vector.shape_cast %250 : vector<1xf32> to vector<1x1x1xf32>
    %252 = vector.extract %251[0, 0, 0] : f32 from vector<1x1x1xf32>
    %cst_103 = arith.constant 5.000000e-01 : f32
    %253 = arith.mulf %cst_103, %252 : f32
    %254 = arith.addf %193, %253 : f32
    %cst_104 = arith.constant dense<0xFF800000> : vector<8xf32>
    %255 = vector.multi_reduction <maximumf>, %234, %cst_104 [1] : vector<8x16xf32> to vector<8xf32>
    %256 = vector.shape_cast %255 : vector<8xf32> to vector<8x1xf32>
    %257 = vector.broadcast %256 : vector<8x1xf32> to vector<8x16xf32>
    %258 = arith.subf %234, %257 : vector<8x16xf32>
    %259 = math.exp %258 : vector<8x16xf32>
    %cst_105 = arith.constant dense<0.000000e+00> : vector<8xf32>
    %260 = vector.multi_reduction <add>, %259, %cst_105 [1] : vector<8x16xf32> to vector<8xf32>
    %261 = vector.shape_cast %260 : vector<8xf32> to vector<8x1xf32>
    %262 = vector.broadcast %261 : vector<8x1xf32> to vector<8x16xf32>
    %263 = arith.divf %259, %262 : vector<8x16xf32>
    %c0_106 = arith.constant 0 : index
    %c0_107 = arith.constant 0 : index
    %264 = vector.load %arg16[%c0_106, %c0_107] : memref<16x32xf32, #tpu.memory_space<vmem>>, vector<16x32xf32>
    %cst_108 = arith.constant dense<0.000000e+00> : vector<8x32xf32>
    %265 = tpu.matmul %263, %264, %cst_108 {dimension_numbers = #tpu.dot_dimension_numbers<[1], [0], [0], [1], [0, 0, 1, 1], [], []>} : vector<8x16xf32>, vector<16x32xf32>, vector<8x32xf32> -> vector<8x32xf32>
    %266 = arith.mulf %265, %153 : vector<8x32xf32>
    %267 = arith.addf %266, %154 : vector<8x32xf32>
    %cst_109 = arith.constant dense<0xFF800000> : vector<8xf32>
    %268 = vector.multi_reduction <maximumf>, %267, %cst_109 [1] : vector<8x32xf32> to vector<8xf32>
    %269 = vector.shape_cast %268 : vector<8xf32> to vector<8x1xf32>
    %270 = vector.broadcast %269 : vector<8x1xf32> to vector<8x32xf32>
    %271 = arith.subf %267, %270 : vector<8x32xf32>
    %272 = math.exp %271 : vector<8x32xf32>
    %cst_110 = arith.constant dense<0.000000e+00> : vector<8xf32>
    %273 = vector.multi_reduction <add>, %272, %cst_110 [1] : vector<8x32xf32> to vector<8xf32>
    %274 = vector.shape_cast %273 : vector<8xf32> to vector<8x1xf32>
    %275 = math.log %274 : vector<8x1xf32>
    %276 = vector.broadcast %275 : vector<8x1xf32> to vector<8x32xf32>
    %277 = arith.subf %271, %276 : vector<8x32xf32>
    %278 = arith.mulf %0, %277 : vector<8x32xf32>
    %279 = vector.shape_cast %278 : vector<8x32xf32> to vector<1x8x32xf32>
    %cst_111 = arith.constant dense<0.000000e+00> : vector<1xf32>
    %280 = vector.multi_reduction <add>, %279, %cst_111 [1, 2] : vector<1x8x32xf32> to vector<1xf32>
    %281 = vector.shape_cast %280 : vector<1xf32> to vector<1x1x1xf32>
    %282 = vector.extract %281[0, 0, 0] : f32 from vector<1x1x1xf32>
    %283 = arith.subf %222, %282 : f32
    %284 = vector.broadcast %145 : vector<1x16xf32> to vector<8x16xf32>
    %285 = arith.addf %284, %70 : vector<8x16xf32>
    %286 = vector.broadcast %147 : vector<1x16xf32> to vector<8x16xf32>
    %287 = arith.addf %286, %71 : vector<8x16xf32>
    %288 = arith.addf %285, %140 : vector<8x16xf32>
    %289 = arith.addf %287, %141 : vector<8x16xf32>
    %cst_112 = arith.constant 1.000000e+00 : f32
    %290 = vector.broadcast %cst_112 : f32 to vector<8x16xf32>
    %291 = arith.divf %290, %288 : vector<8x16xf32>
    %292 = arith.mulf %289, %291 : vector<8x16xf32>
    %c2 = arith.constant 2 : index
    %c0_113 = arith.constant 0 : index
    %c0_114 = arith.constant 0 : index
    %293 = vector.load %arg22[%c2, %c0_113, %c0_114] : memref<3x8x16xf32, #tpu.memory_space<vmem>>, vector<1x8x16xf32>
    %294 = vector.shape_cast %293 : vector<1x8x16xf32> to vector<8x16xf32>
    %295 = math.sqrt %291 : vector<8x16xf32>
    %296 = arith.mulf %294, %295 : vector<8x16xf32>
    %297 = arith.addf %296, %292 : vector<8x16xf32>
    %298 = vector.broadcast %142 : vector<1x16xf32> to vector<8x16xf32>
    %299 = arith.subf %298, %292 : vector<8x16xf32>
    %300 = vector.broadcast %145 : vector<1x16xf32> to vector<8x16xf32>
    %301 = arith.mulf %291, %300 : vector<8x16xf32>
    %302 = vector.broadcast %145 : vector<1x16xf32> to vector<8x16xf32>
    %303 = arith.mulf %299, %302 : vector<8x16xf32>
    %304 = arith.mulf %303, %299 : vector<8x16xf32>
    %305 = arith.addf %301, %304 : vector<8x16xf32>
    %cst_115 = arith.constant 1.600000e+01 : f32
    %306 = vector.broadcast %cst_115 : f32 to vector<8x16xf32>
    %307 = arith.subf %305, %306 : vector<8x16xf32>
    %308 = vector.broadcast %146 : vector<1x16xf32> to vector<8x16xf32>
    %309 = arith.addf %307, %308 : vector<8x16xf32>
    %310 = math.log %291 : vector<8x16xf32>
    %311 = arith.subf %309, %310 : vector<8x16xf32>
    %312 = vector.shape_cast %311 : vector<8x16xf32> to vector<1x8x16xf32>
    %cst_116 = arith.constant dense<0.000000e+00> : vector<1xf32>
    %313 = vector.multi_reduction <add>, %312, %cst_116 [1, 2] : vector<1x8x16xf32> to vector<1xf32>
    %314 = vector.shape_cast %313 : vector<1xf32> to vector<1x1x1xf32>
    %315 = vector.extract %314[0, 0, 0] : f32 from vector<1x1x1xf32>
    %cst_117 = arith.constant 5.000000e-01 : f32
    %316 = arith.mulf %cst_117, %315 : f32
    %317 = arith.addf %254, %316 : f32
    %cst_118 = arith.constant dense<0xFF800000> : vector<8xf32>
    %318 = vector.multi_reduction <maximumf>, %297, %cst_118 [1] : vector<8x16xf32> to vector<8xf32>
    %319 = vector.shape_cast %318 : vector<8xf32> to vector<8x1xf32>
    %320 = vector.broadcast %319 : vector<8x1xf32> to vector<8x16xf32>
    %321 = arith.subf %297, %320 : vector<8x16xf32>
    %322 = math.exp %321 : vector<8x16xf32>
    %cst_119 = arith.constant dense<0.000000e+00> : vector<8xf32>
    %323 = vector.multi_reduction <add>, %322, %cst_119 [1] : vector<8x16xf32> to vector<8xf32>
    %324 = vector.shape_cast %323 : vector<8xf32> to vector<8x1xf32>
    %325 = vector.broadcast %324 : vector<8x1xf32> to vector<8x16xf32>
    %326 = arith.divf %322, %325 : vector<8x16xf32>
    %c0_120 = arith.constant 0 : index
    %c0_121 = arith.constant 0 : index
    %327 = vector.load %arg16[%c0_120, %c0_121] : memref<16x32xf32, #tpu.memory_space<vmem>>, vector<16x32xf32>
    %cst_122 = arith.constant dense<0.000000e+00> : vector<8x32xf32>
    %328 = tpu.matmul %326, %327, %cst_122 {dimension_numbers = #tpu.dot_dimension_numbers<[1], [0], [0], [1], [0, 0, 1, 1], [], []>} : vector<8x16xf32>, vector<16x32xf32>, vector<8x32xf32> -> vector<8x32xf32>
    %329 = arith.mulf %328, %153 : vector<8x32xf32>
    %330 = arith.addf %329, %154 : vector<8x32xf32>
    %cst_123 = arith.constant dense<0xFF800000> : vector<8xf32>
    %331 = vector.multi_reduction <maximumf>, %330, %cst_123 [1] : vector<8x32xf32> to vector<8xf32>
    %332 = vector.shape_cast %331 : vector<8xf32> to vector<8x1xf32>
    %333 = vector.broadcast %332 : vector<8x1xf32> to vector<8x32xf32>
    %334 = arith.subf %330, %333 : vector<8x32xf32>
    %335 = math.exp %334 : vector<8x32xf32>
    %cst_124 = arith.constant dense<0.000000e+00> : vector<8xf32>
    %336 = vector.multi_reduction <add>, %335, %cst_124 [1] : vector<8x32xf32> to vector<8xf32>
    %337 = vector.shape_cast %336 : vector<8xf32> to vector<8x1xf32>
    %338 = math.log %337 : vector<8x1xf32>
    %339 = vector.broadcast %338 : vector<8x1xf32> to vector<8x32xf32>
    %340 = arith.subf %334, %339 : vector<8x32xf32>
    %341 = arith.mulf %0, %340 : vector<8x32xf32>
    %342 = vector.shape_cast %341 : vector<8x32xf32> to vector<1x8x32xf32>
    %cst_125 = arith.constant dense<0.000000e+00> : vector<1xf32>
    %343 = vector.multi_reduction <add>, %342, %cst_125 [1, 2] : vector<1x8x32xf32> to vector<1xf32>
    %344 = vector.shape_cast %343 : vector<1xf32> to vector<1x1x1xf32>
    %345 = vector.extract %344[0, 0, 0] : f32 from vector<1x1x1xf32>
    %346 = arith.subf %283, %345 : f32
    %c0_126 = arith.constant 0 : index
    %c0_127 = arith.constant 0 : index
    %347 = vector.load %arg17[%c0_126, %c0_127] : memref<16x16xf32, #tpu.memory_space<vmem>>, vector<16x16xf32>
    %cst_128 = arith.constant dense<0.000000e+00> : vector<8x16xf32>
    %348 = tpu.matmul %326, %347, %cst_128 {dimension_numbers = #tpu.dot_dimension_numbers<[1], [0], [0], [1], [0, 0, 1, 1], [], []>} : vector<8x16xf32>, vector<16x16xf32>, vector<8x16xf32> -> vector<8x16xf32>
    %349 = arith.mulf %348, %160 : vector<8x16xf32>
    %350 = arith.addf %349, %161 : vector<8x16xf32>
    %cst_129 = arith.constant dense<0xFF800000> : vector<8xf32>
    %351 = vector.multi_reduction <maximumf>, %350, %cst_129 [1] : vector<8x16xf32> to vector<8xf32>
    %352 = vector.shape_cast %351 : vector<8xf32> to vector<8x1xf32>
    %353 = vector.broadcast %352 : vector<8x1xf32> to vector<8x16xf32>
    %354 = arith.subf %350, %353 : vector<8x16xf32>
    %355 = math.exp %354 : vector<8x16xf32>
    %cst_130 = arith.constant dense<0.000000e+00> : vector<8xf32>
    %356 = vector.multi_reduction <add>, %355, %cst_130 [1] : vector<8x16xf32> to vector<8xf32>
    %357 = vector.shape_cast %356 : vector<8xf32> to vector<8x1xf32>
    %358 = math.log %357 : vector<8x1xf32>
    %359 = vector.broadcast %358 : vector<8x1xf32> to vector<8x16xf32>
    %360 = arith.subf %354, %359 : vector<8x16xf32>
    %361 = arith.mulf %1, %360 : vector<8x16xf32>
    %362 = vector.shape_cast %361 : vector<8x16xf32> to vector<1x8x16xf32>
    %cst_131 = arith.constant dense<0.000000e+00> : vector<1xf32>
    %363 = vector.multi_reduction <add>, %362, %cst_131 [1, 2] : vector<1x8x16xf32> to vector<1xf32>
    %364 = vector.shape_cast %363 : vector<1xf32> to vector<1x1x1xf32>
    %365 = vector.extract %364[0, 0, 0] : f32 from vector<1x1x1xf32>
    %366 = arith.subf %346, %365 : f32
    %c0_132 = arith.constant 0 : index
    %c0_133 = arith.constant 0 : index
    %367 = memref.load %arg23[%c0_132, %c0_133] : memref<1x1xf32, #tpu.memory_space<smem>>
    memref.store %317, %arg23[%c0_132, %c0_133] : memref<1x1xf32, #tpu.memory_space<smem>>
    %c0_134 = arith.constant 0 : index
    %c0_135 = arith.constant 0 : index
    %368 = memref.load %arg24[%c0_134, %c0_135] : memref<1x1xf32, #tpu.memory_space<smem>>
    memref.store %366, %arg24[%c0_134, %c0_135] : memref<1x1xf32, #tpu.memory_space<smem>>
    return
  }
}

</mosaic_0001>

<bundles_post_ra>
// kernel: tpu_custom_call.1
= control target key start
LH: loop header
LB: loop body
LE: loop exit
PB: predicated region body
PF: predicated region fallthrough
CT: control target
= control target key end

     0   :  { %s2555_s0 = inlined_call_operand.hbm [shape: f32[8,32], index: 0, kind: input, shape index: {}]   ;;  %s2556_s1 = inlined_call_operand.hbm [shape: f32[8,16], index: 1, kind: input, shape index: {}]   ;;  %s2557_s2 = inlined_call_operand.vmem [shape: f32[8,4], index: 2, kind: input, shape index: {}]   ;;  %s2558_s3 = inlined_call_operand.vmem [shape: f32[8,2], index: 3, kind: input, shape index: {}]   ;;  %s2559_s4 = inlined_call_operand.vmem [shape: f32[32,32], index: 4, kind: input, shape index: {}]   ;;  %s2560_s5 = inlined_call_operand.hbm [shape: f32[1,32], index: 5, kind: input, shape index: {}]   ;;  %s2561_s6 = inlined_call_operand.vmem [shape: f32[32,16], index: 6, kind: input, shape index: {}]   ;;  %s2562_s7 = inlined_call_operand.hbm [shape: f32[1,16], index: 7, kind: input, shape index: {}]   ;;  %s2563_s8 = inlined_call_operand.vmem [shape: f32[16,32], index: 8, kind: input, shape index: {}]   ;;  %s2564_s9 = inlined_call_operand.hbm [shape: f32[1,32], index: 9, kind: input, shape index: {}]   ;;  %s2565_s10 = inlined_call_operand.vmem [shape: f32[32,16], index: 10, kind: input, shape index: {}]   ;;  %s2566_s11 = inlined_call_operand.hbm [shape: f32[1,16], index: 11, kind: input, shape index: {}]   ;;  %s2567_s12 = inlined_call_operand.vmem [shape: f32[16,32], index: 12, kind: input, shape index: {}]   ;;  %s2568_s13 = inlined_call_operand.hbm [shape: f32[1,32], index: 13, kind: input, shape index: {}]   ;;  %s2569_s14 = inlined_call_operand.vmem [shape: f32[16,32], index: 14, kind: input, shape index: {}]   ;;  %s2570_s15 = inlined_call_operand.hbm [shape: f32[1,32], index: 15, kind: input, shape index: {}]   ;;  %s2571_s16 = inlined_call_operand.vmem [shape: f32[16,32], index: 16, kind: input, shape index: {}]   ;;  %s2572_s17 = inlined_call_operand.vmem [shape: f32[16,16], index: 17, kind: input, shape index: {}]   ;;  %s2573_s18 = inlined_call_operand.vmem [shape: f32[4,64], index: 18, kind: input, shape index: {}]   ;;  %s2574_s19 = inlined_call_operand.vmem [shape: f32[2,32], index: 19, kind: input, shape index: {}]   ;;  %s2575_s20 = inlined_call_operand.vmem [shape: f32[1,16], index: 20, kind: input, shape index: {}]   ;;  %s2576_s21 = inlined_call_operand.vmem [shape: f32[1,16], index: 21, kind: input, shape index: {}]   ;;  %s2577_s22 = inlined_call_operand.vmem [shape: f32[3,8,16], index: 22, kind: input, shape index: {}]   ;;  %s2578_s23 = inlined_call_operand.hbm [shape: f32[1,1], index: 23, kind: output, shape index: {0}]   ;;  %s2579_s24 = inlined_call_operand.hbm [shape: f32[1,1], index: 24, kind: output, shape index: {1}]  }
   0x1   :  { %2587 = sst [smem:[#allocation26_spill]] %s2555_s0 }
   0x2   :  { %2588 = sst [smem:[#allocation27_spill]] %s2556_s1 }
   0x3   :  { %2589 = sst [smem:[#allocation28_spill]] %s2557_s2 }
   0x4   :  { %2590 = sst [smem:[#allocation29_spill]] %s2558_s3 }
   0x5   :  { %2591 = sst [smem:[#allocation30_spill]] %s2559_s4 }
   0x6   :  { %2592 = sst [smem:[#allocation31_spill]] %s2560_s5 }
   0x7   :  { %2593 = sst [smem:[#allocation32_spill]] %s2561_s6 }
   0x8   :  { %2594 = sst [smem:[#allocation33_spill]] %s2562_s7 }
   0x9   :  { %2595 = sst [smem:[#allocation34_spill]] %s2563_s8 }
   0xa   :  { %30 = vsyncpa [#allocation3], 0 }
   0xb   :  { %31 = vsyncpa [#allocation6], 0 }
   0xc   :  { %32 = vsyncpa [#allocation9], 0 }
   0xd   :  { %33 = vsyncpa [#allocation12], 0 }
   0xe   :  { %34 = vsyncpa [#allocation15], 0 }
   0xf   :  { %35 = vsyncpa [#allocation4], 0 }
  0x10   :  { %36 = vsyncpa [#allocation18], 0  ;;  %s2078_s5 = smov [#allocation5]   ;;  %s2079_s27 = smov [#allocation8]  }
  0x11   :  { %s53_s26 = sshll.u32 %s2078_s5, 4  ;;  %s81_s28 = sshll.u32 %s2079_s27, 4  ;;  %s54_s26 = int_to_ptr.vmem [resolvable:$true] %s53_s26  ;;  %s82_s28 = int_to_ptr.vmem [resolvable:$true] %s81_s28 }
  0x12   :  { %s2596_s29 = sld [smem:[#allocation27_spill]] }
  0x18   :  { %s1868_s0 = scalar_lea.hbm %s2596_s29, 128 }
  0x19   :  { %p1869_p0 = scmp.ne.s32.totalorder %s2596_s29, %s1868_s0  ;;  %p1872_p1 = scmp.lt.u32.totalorder %s1868_s0, %s2596_s29 }
  0x1b   :  { %p1874_p2 = pnand %p1872_p1, %p1869_p0 }
  0x1d   :  { %1877 = shalt.err (!%p1874_p2)
}
  0x1e   :  { %s1878_s8 = scalar_lea.vmem %s54_s26, 128  ;;  %p1883_p4 = scmp.lt.s32.totalorder %s54_s26, %s54_s26 }
  0x1f   :  { %p1879_p3 = scmp.ne.s32.totalorder %s54_s26, %s1878_s8  ;;  %p1884_p5 = scmp.lt.s32.totalorder %s1878_s8, %s1878_s8 }
  0x21   :  { %p1885_p6 = por %p1884_p5, %p1883_p4 }
  0x23   :  { %p1886_p7 = pnand %p1885_p6, %p1879_p3 }
  0x25   :  { %1889 = shalt.err (!%p1886_p7)
}
  0x26   :  { %56 = dma.hbm_to_vmem [thread:$0]  %s2596_s29, 128, %s54_s26, [#allocation6]  }
  0x27   :  { %s2597_s6 = sld [smem:[#allocation33_spill]] }
  0x2d   :  { %s1890_s2 = scalar_lea.hbm %s2597_s6, 16 }
  0x2e   :  { %p1891_p8 = scmp.ne.s32.totalorder %s2597_s6, %s1890_s2  ;;  %p1894_p9 = scmp.lt.u32.totalorder %s1890_s2, %s2597_s6 }
  0x30   :  { %p1896_p10 = pnand %p1894_p9, %p1891_p8 }
  0x32   :  { %1899 = shalt.err (!%p1896_p10)
}
  0x33   :  { %s1900_s25 = scalar_lea.vmem %s82_s28, 16  ;;  %s1904_s8 = scalar_lea.vmem %s82_s28, 32 }
  0x34   :  { %p1901_p11 = scmp.ne.s32.totalorder %s82_s28, %s1900_s25  ;;  %p1905_p12 = scmp.lt.s32.totalorder %s82_s28, %s82_s28 }
  0x35   :  { %p1906_p13 = scmp.lt.s32.totalorder %s1904_s8, %s1900_s25 }
  0x37   :  { %p1907_p0 = por %p1906_p13, %p1905_p12 }
  0x39   :  { %p1908_p1 = pnand %p1907_p0, %p1901_p11 }
  0x3b   :  { %1911 = shalt.err (!%p1908_p1)
}
  0x3c   :  { %84 = dma.hbm_to_vmem [thread:$0]  %s2597_s6, 16, %s82_s28, [#allocation9]  }
  0x3d   :  { %s2080_s4 = smov [#allocation11]   ;;  %s2081_s5 = smov [#allocation2]  }
  0x3e   :  { %s105_s1 = sshll.u32 %s2080_s4, 4  ;;  %s43_s27 = sshll.u32 %s2081_s5, 4  ;;  %s106_s1 = int_to_ptr.vmem [resolvable:$true] %s105_s1  ;;  %s44_s27 = int_to_ptr.vmem [resolvable:$true] %s43_s27 }
  0x3f   :  { %s1912_s30 = scalar_lea.hbm %s2566_s11, 16 }
  0x40   :  { %p1913_p2 = scmp.ne.s32.totalorder %s2566_s11, %s1912_s30  ;;  %p1916_p3 = scmp.lt.u32.totalorder %s1912_s30, %s2566_s11 }
  0x42   :  { %p1918_p4 = pnand %p1916_p3, %p1913_p2 }
  0x44   :  { %1921 = shalt.err (!%p1918_p4)
}
  0x45   :  { %s1922_s28 = scalar_lea.vmem %s106_s1, 16  ;;  %s1926_s6 = scalar_lea.vmem %s106_s1, 32 }
  0x46   :  { %p1923_p5 = scmp.ne.s32.totalorder %s106_s1, %s1922_s28  ;;  %p1927_p6 = scmp.lt.s32.totalorder %s106_s1, %s106_s1 }
  0x47   :  { %p1928_p7 = scmp.lt.s32.totalorder %s1926_s6, %s1922_s28 }
  0x49   :  { %p1929_p8 = por %p1928_p7, %p1927_p6 }
  0x4b   :  { %p1930_p9 = pnand %p1929_p8, %p1923_p5 }
  0x4d   :  { %1933 = shalt.err (!%p1930_p9)
}
  0x4e   :  { %108 = dma.hbm_to_vmem [thread:$0]  %s2566_s11, 16, %s106_s1, [#allocation12]  }
  0x4f   :  { %s2598_s2 = sld [smem:[#allocation26_spill]] }
  0x55   :  { %s1934_s7 = scalar_lea.hbm %s2598_s2, 128 }
  0x56   :  { %p1935_p10 = scmp.ne.s32.totalorder %s2598_s2, %s1934_s7  ;;  %p1938_p11 = scmp.lt.u32.totalorder %s1934_s7, %s2598_s2 }
  0x58   :  { %p1940_p12 = pnand %p1938_p11, %p1935_p10 }
  0x5a   :  { %1943 = shalt.err (!%p1940_p12)
}
  0x5b   :  { %s1944_s8 = scalar_lea.vmem %s44_s27, 128  ;;  %p1949_p0 = scmp.lt.s32.totalorder %s44_s27, %s44_s27 }
  0x5c   :  { %p1945_p13 = scmp.ne.s32.totalorder %s44_s27, %s1944_s8  ;;  %p1950_p1 = scmp.lt.s32.totalorder %s1944_s8, %s1944_s8 }
  0x5e   :  { %p1951_p2 = por %p1950_p1, %p1949_p0 }
  0x60   :  { %p1952_p3 = pnand %p1951_p2, %p1945_p13 }
  0x62   :  { %1955 = shalt.err (!%p1952_p3)
}
  0x63   :  { %46 = dma.hbm_to_vmem [thread:$0]  %s2598_s2, 128, %s44_s27, [#allocation3]  }
  0x64   :  { %s2082_s28 = smov [#allocation7]   ;;  %s2083_s26 = smov [#allocation10]  }
  0x65   :  { %s69_s6 = sshll.u32 %s2082_s28, 4  ;;  %s93_s29 = sshll.u32 %s2083_s26, 4  ;;  %s70_s6 = int_to_ptr.vmem [resolvable:$true] %s69_s6  ;;  %s94_s29 = int_to_ptr.vmem [resolvable:$true] %s93_s29 }
  0x66   :  { %s2599_s7 = sld [smem:[#allocation31_spill]] }
  0x6c   :  { %s1956_s0 = scalar_lea.hbm %s2599_s7, 16 }
  0x6d   :  { %p1957_p4 = scmp.ne.s32.totalorder %s2599_s7, %s1956_s0  ;;  %p1960_p5 = scmp.lt.u32.totalorder %s1956_s0, %s2599_s7 }
  0x6f   :  { %p1962_p6 = pnand %p1960_p5, %p1957_p4 }
  0x71   :  { %1965 = shalt.err (!%p1962_p6)
}
  0x72   :  { %s1966_s27 = scalar_lea.vmem %s70_s6, 16  ;;  %s1970_s2 = scalar_lea.vmem %s70_s6, 32 }
  0x73   :  { %p1967_p7 = scmp.ne.s32.totalorder %s70_s6, %s1966_s27  ;;  %p1971_p8 = scmp.lt.s32.totalorder %s70_s6, %s70_s6 }
  0x74   :  { %p1972_p9 = scmp.lt.s32.totalorder %s1970_s2, %s1966_s27 }
  0x76   :  { %p1973_p10 = por %p1972_p9, %p1971_p8 }
  0x78   :  { %p1974_p11 = pnand %p1973_p10, %p1967_p7 }
  0x7a   :  { %1977 = shalt.err (!%p1974_p11)
}
  0x7b   :  { %72 = dma.hbm_to_vmem [thread:$0]  %s2599_s7, 16, %s70_s6, [#allocation6]  }
  0x7c   :  { %s1978_s4 = scalar_lea.hbm %s2564_s9, 16 }
  0x7d   :  { %p1979_p12 = scmp.ne.s32.totalorder %s2564_s9, %s1978_s4  ;;  %p1982_p13 = scmp.lt.u32.totalorder %s1978_s4, %s2564_s9 }
  0x7f   :  { %p1984_p0 = pnand %p1982_p13, %p1979_p12 }
  0x81   :  { %1987 = shalt.err (!%p1984_p0)
}
  0x82   :  { %s1988_s25 = scalar_lea.vmem %s94_s29, 16  ;;  %s1992_s8 = scalar_lea.vmem %s94_s29, 32 }
  0x83   :  { %p1989_p1 = scmp.ne.s32.totalorder %s94_s29, %s1988_s25  ;;  %p1993_p2 = scmp.lt.s32.totalorder %s94_s29, %s94_s29 }
  0x84   :  { %p1994_p3 = scmp.lt.s32.totalorder %s1992_s8, %s1988_s25 }
  0x86   :  { %p1995_p4 = por %p1994_p3, %p1993_p2 }
  0x88   :  { %p1996_p5 = pnand %p1995_p4, %p1989_p1 }
  0x8a   :  { %1999 = shalt.err (!%p1996_p5)
}
  0x8b   :  { %96 = dma.hbm_to_vmem [thread:$0]  %s2564_s9, 16, %s94_s29, [#allocation9]  }
  0x8c   :  { %s2084_s27 = smov [#allocation13]   ;;  %s2085_s11 = smov [#allocation14]  }
  0x8d   :  { %s117_s2 = sshll.u32 %s2084_s27, 4  ;;  %s129_s1 = sshll.u32 %s2085_s11, 4  ;;  %s118_s2 = int_to_ptr.vmem [resolvable:$true] %s117_s2  ;;  %s130_s1 = int_to_ptr.vmem [resolvable:$true] %s129_s1 }
  0x8e   :  { %s2000_s4 = scalar_lea.hbm %s2568_s13, 16 }
  0x8f   :  { %p2001_p6 = scmp.ne.s32.totalorder %s2568_s13, %s2000_s4  ;;  %p2004_p7 = scmp.lt.u32.totalorder %s2000_s4, %s2568_s13 }
  0x91   :  { %p2006_p8 = pnand %p2004_p7, %p2001_p6 }
  0x93   :  { %2009 = shalt.err (!%p2006_p8)
}
  0x94   :  { %s2010_s9 = scalar_lea.vmem %s118_s2, 16  ;;  %s2014_s29 = scalar_lea.vmem %s118_s2, 32 }
  0x95   :  { %p2011_p9 = scmp.ne.s32.totalorder %s118_s2, %s2010_s9  ;;  %p2015_p10 = scmp.lt.s32.totalorder %s118_s2, %s118_s2 }
  0x96   :  { %p2016_p11 = scmp.lt.s32.totalorder %s2014_s29, %s2010_s9 }
  0x98   :  { %p2017_p12 = por %p2016_p11, %p2015_p10 }
  0x9a   :  { %p2018_p13 = pnand %p2017_p12, %p2011_p9 }
  0x9c   :  { %2021 = shalt.err (!%p2018_p13)
}
  0x9d   :  { %120 = dma.hbm_to_vmem [thread:$0]  %s2568_s13, 16, %s118_s2, [#allocation12]  }
  0x9e   :  { %s2022_s27 = scalar_lea.hbm %s2570_s15, 16 }
  0x9f   :  { %p2023_p0 = scmp.ne.s32.totalorder %s2570_s15, %s2022_s27  ;;  %p2026_p1 = scmp.lt.u32.totalorder %s2022_s27, %s2570_s15 }
  0xa1   :  { %p2028_p2 = pnand %p2026_p1, %p2023_p0 }
  0xa3   :  { %2031 = shalt.err (!%p2028_p2)
}
  0xa4   :  { %s2032_s5 = scalar_lea.vmem %s130_s1, 16  ;;  %s2036_s0 = scalar_lea.vmem %s130_s1, 32 }
  0xa5   :  { %p2033_p3 = scmp.ne.s32.totalorder %s130_s1, %s2032_s5  ;;  %p2037_p4 = scmp.lt.s32.totalorder %s130_s1, %s130_s1 }
  0xa6   :  { %p2038_p5 = scmp.lt.s32.totalorder %s2036_s0, %s2032_s5 }
  0xa8   :  { %p2039_p6 = por %p2038_p5, %p2037_p4 }
  0xaa   :  { %p2040_p7 = pnand %p2039_p6, %p2033_p3 }
  0xac   :  { %2043 = shalt.err (!%p2040_p7)
}
  0xad   :  { %132 = dma.hbm_to_vmem [thread:$0]  %s2570_s15, 16, %s130_s1, [#allocation15]  }
  0xae   :  { %2064 = dma.done.wait [#allocation3], 128  }
  0xaf   :  { %2065 = vsyncadd [#allocation3], 4294967168 }
  0xb0   :  { %2066 = dma.done.wait [#allocation6], 144  }
  0xb1   :  { %2067 = vsyncadd [#allocation6], 4294967152 }
  0xb2   :  { %2068 = dma.done.wait [#allocation9], 32  }
  0xb3   :  { %2069 = vsyncadd [#allocation9], 4294967264 }
  0xb4   :  { %2070 = dma.done.wait [#allocation12], 32  }
  0xb5   :  { %2071 = vsyncadd [#allocation12], 4294967264 }
  0xb6   :  { %2072 = dma.done.wait [#allocation15], 16  }
  0xb7   :  { %2073 = vsyncadd [#allocation15], 4294967280  ;;  %v2086_v0 = vmov 0.0|0.0   ;;  %vm2087_vm0 = vmmov 0   ;;  %v2088_v1 = vmov 0.0   ;;  %s2600_s30 = sld [smem:[#allocation30_spill]] }
  0xb8   :  { %1734 = vmatprep.subr.bf16.mxu0 %v2086_v0  ;;  %1650 = vmatprep.mubr.msk.f32.mxu0 %vm2087_vm0, %v2088_v1  ;;  %v2332_v7 = vld [vmem:[#allocation2] sm:$0xff]  ;;  %vm187_vm1 = vcmask 261120   ;;  %s2601_s11 = sld [smem:[#allocation32_spill]]  ;;  %v1577_v18 = vld [vmem:[#allocation7] ss:$0 sm:$0xff]  ;;  %v2356_v41 = vld [vmem:[#allocation5] sm:$0xff] }
  0xb9   :  { %1740 = vmatprep.subr.bf16.mxu1 %v2086_v0  ;;  %1661 = vmatprep.mubr.msk.f32.mxu1 %vm2087_vm0, %v2088_v1  ;;  %v173_v8 = vadd.f32 1.0, %v2332_v7  ;;  %v488_v43 = vadd.f32 1.0, %v2356_v41  ;;  %s2602_s1 = sld [smem:[#allocation34_spill]]  ;;  %vm371_vm3 = vcmask 130048   ;;  %v398_v54 = vld [vmem:[%s2567_s12] sm:$0xff]  ;;  %v399_v55 = vld [vmem:[%s2567_s12 + $0x8] sm:$0xff] }
  0xba   :  { %v1747_v56 = vpack.c.bf16 %v399_v55, %v398_v54  ;;  %v1579_v57 = vld [vmem:[#allocation8] ss:$0 sm:$0xff]  ;;  %v1583_v61 = vld [vmem:[#allocation10] ss:$0 sm:$0xff]  ;;  %v602_v54 = vld [vmem:[%s2565_s10 + $0x18] sm:$0xff]  ;;  %vm893_vm13 = vcmask 1041408  }
  0xbb   :  { %1802 = vlog2.f32 %v173_v8  ;;  %s2603_s7 = sld [smem:[#allocation29_spill]]  ;;  %vm889_vm14 = vcmask 15360   ;;  %vm812_vm15 = vcmask 1043456   ;;  %s2604_s4 = sld [smem:[#allocation28_spill]] }
  0xbc   :  { %s2044_s26 = scalar_lea.hbm %s2578_s23, 16 }
  0xbd   :  { %v176_v2 = vld [vmem:[%s2600_s30] sm:$0xff]  ;;  %v177_v3 = vld [vmem:[%s2600_s30 + $0x8] sm:$0xff]  ;;  %v178_v4 = vld [vmem:[%s2600_s30 + $0x10] sm:$0xff]  ;;  %p2045_p8 = scmp.ne.s32.totalorder %s2578_s23, %s2044_s26  ;;  %p2048_p9 = scmp.lt.u32.totalorder %s2044_s26, %s2578_s23 }
  0xbe   :  { %v1735_v5 = vpack.c.bf16 %v177_v3, %v176_v2  ;;  %v179_v6 = vld [vmem:[%s2600_s30 + $0x18] sm:$0xff]  ;;  %v287_v12 = vld [vmem:[%s2601_s11] sm:$0xff]  ;;  %v288_v13 = vld [vmem:[%s2601_s11 + $0x8] sm:$0xff] }
  0xbf   :  { %v1738_v9 = vpack.c.bf16 %v179_v6, %v178_v4  ;;  %v1741_v14 = vpack.c.bf16 %v288_v13, %v287_v12  ;;  %v289_v15 = vld [vmem:[%s2601_s11 + $0x10] sm:$0xff]  ;;  %v290_v16 = vld [vmem:[%s2601_s11 + $0x18] sm:$0xff]  ;;  %v491_v46 = vld [vmem:[%s2602_s1] sm:$0xff]  ;;  %p2050_p10 = pnand %p2048_p9, %p2045_p8 }
  0xc0   :  { %1736 = vmatpush3.bf16.msra.mxu0 %v1735_v5  ;;  %v1744_v17 = vpack.c.bf16 %v290_v16, %v289_v15  ;;  %v492_v47 = vld [vmem:[%s2602_s1 + $0x8] sm:$0xff] }
  0xc1   :  { %1737 = vmatprep.subr.bf16.mxu0 %v2086_v0  ;;  %1742 = vmatpush3.bf16.msra.mxu1 %v1741_v14  ;;  %v1750_v51 = vpack.c.bf16 %v492_v47, %v491_v46  ;;  %v599_v47 = vld [vmem:[%s2565_s10] sm:$0xff] }
  0xc2   :  { %1743 = vmatprep.subr.bf16.mxu1 %v2086_v0 }
  0xc4   :  { %1739 = vmatpush3.bf16.msra.mxu0 %v1738_v9 }
  0xc5   :  { %1746 = vmatprep.subr.bf16.mxu0 %v2086_v0  ;;  %v1803_v10 = vpop.eup %1802  ;;  %1745 = vmatpush3.bf16.msra.mxu1 %v1744_v17 }
  0xc6   :  { %v175_v11 = vmul.f32 0.6931472, %v1803_v10  ;;  %1749 = vmatprep.subr.bf16.mxu1 %v2086_v0 }
  0xc8   :  { %1651 = vmatmul.mubr.msk.f32.vlgmr.msra.gmra.mrb[0].mxu0 %vm187_vm1, %v175_v11 }
  0xc9   :  { %1668 = vmatprep.mubr.msk.f32.mxu0 %vm2087_vm0, %v2088_v1  ;;  %1748 = vmatpush3.bf16.msra.mxu0 %v1747_v56 }
  0xca   :  { %1752 = vmatprep.subr.bf16.mxu0 %v2086_v0 }
 0x19b   :  { %v257_v19 = vpop.f32.mrb[0].mxu0 }
 0x19c   :  { %v258_v20 = vadd.f32 %v1577_v18, %v257_v19  ;;  %v1652_v21 = vpop.f32.mrb[1].mxu0 }
 0x19e   :  { %v261_v22 = vsel %vm187_vm1, %v258_v20, 0.0  ;;  %v269_v23 = vmul.f32 %v258_v20, %v258_v20 }
 0x19f   :  { %v262_v24 = vrot.slane %v261_v22, 4 }
 0x1a0   :  { %v270_v25 = vsel %vm187_vm1, %v269_v23, 0.0 }
 0x1a1   :  { %v263_v26 = vadd.f32 %v262_v24, %v261_v22  ;;  %v271_v27 = vrot.slane %v270_v25, 4 }
 0x1a3   :  { %v264_v28 = vrot.slane %v263_v26, 2  ;;  %v272_v29 = vadd.f32 %v271_v27, %v270_v25 }
 0x1a5   :  { %v265_v30 = vadd.f32 %v264_v28, %v263_v26  ;;  %v273_v31 = vrot.slane %v272_v29, 2 }
 0x1a7   :  { %v266_v32 = vrot.slane %v265_v30, 1  ;;  %v274_v33 = vadd.f32 %v273_v31, %v272_v29 }
 0x1a9   :  { %v267_v34 = vadd.f32 %v266_v32, %v265_v30  ;;  %v275_v35 = vrot.slane %v274_v33, 1 }
 0x1ab   :  { %v268_v36 = vmul.f32 0.125, %v267_v34  ;;  %v276_v37 = vadd.f32 %v275_v35, %v274_v33 }
 0x1ad   :  { %v277_v38 = vmul.f32 0.125, %v276_v37  ;;  %v278_v39 = vmul.f32 %v268_v36, %v268_v36  ;;  %v280_v44 = vsub.f32 %v258_v20, %v268_v36 }
 0x1af   :  { %v279_v40 = vsub.f32 %v277_v38, %v278_v39 }
 0x1b1   :  { %v281_v42 = vadd.f32 1e-05, %v279_v40 }
 0x1b3   :  { %1804 = vrsqrt.f32 %v281_v42 }
 0x1b4   :  { %1806 = vlog2.f32 %v488_v43 }
 0x1bd   :  { %v1805_v45 = vpop.eup %1804 }
 0x1be   :  { %v283_v48 = vmul.f32 %v1805_v45, %v280_v44  ;;  %v1807_v49 = vpop.eup %1806 }
 0x1bf   :  { %v490_v53 = vmul.f32 0.6931472, %v1807_v49 }
 0x1c0   :  { %vm284_vm2 = vcmp.ge.f32.partialorder %v283_v48, 0.0  ;;  %v285_v50 = vmul.f32 0.01, %v283_v48 }
 0x1c2   :  { %v286_v52 = vsel %vm284_vm2, %v283_v48, %v285_v50  ;;  %v600_v48 = vld [vmem:[%s2565_s10 + $0x8] sm:$0xff]  ;;  %vm808_vm2 = vcmask 31744  }
 0x1c3   :  { %1662 = vmatmul.mubr.msk.f32.vlgmr.msra.gmra.mrb[0].mxu1 %vm187_vm1, %v286_v52 }
 0x1c4   :  { %1751 = vmatpush3.bf16.msra.mxu1 %v1750_v51  ;;  %1675 = vmatprep.mubr.msk.f32.mxu1 %vm2087_vm0, %v2088_v1  ;;  %v1753_v51 = vpack.c.bf16 %v600_v48, %v599_v47  ;;  %v800_v47 = vld [vmem:[%s2576_s21] sm:$0x1]  ;;  %v969_v48 = vlaneseq }
 0x1c5   :  { %1758 = vmatprep.subr.bf16.mxu1 %v2086_v0 }
 0x1c7   :  { %1676 = vmatmul.mubr.msk.f32.vlgmr.msra.gmra.mrb[2].mxu1 %vm371_vm3, %v490_v53  ;;  %v601_v53 = vld [vmem:[%s2565_s10 + $0x10] sm:$0xff] }
 0x1c8   :  { %1693 = vmatprep.mubr.msk.f32.mxu1 %vm2087_vm0, %v2088_v1 }
 0x296   :  { %v367_v58 = vpop.f32.mrb[0].mxu1 }
 0x297   :  { %v368_v59 = vadd.f32 %v1579_v57, %v367_v58  ;;  %v1663_v60 = vpop.f32.mrb[1].mxu1  ;;  %v1756_v58 = vpack.c.bf16 %v602_v54, %v601_v53  ;;  %v799_v54 = vld [vmem:[%s2575_s20] sm:$0x1] }
 0x299   :  { %v372_v62 = vsel %vm371_vm3, %v368_v59, 0.0  ;;  %v380_v63 = vmul.f32 %v368_v59, %v368_v59 }
 0x29a   :  { %v373_v2 = vrot.slane %v372_v62, 4  ;;  %v569_v3 = vpop.f32.mrb[2].mxu1 }
 0x29b   :  { %v381_v4 = vsel %vm371_vm3, %v380_v63, 0.0  ;;  %v570_v5 = vadd.f32 %v1583_v61, %v569_v3  ;;  %v1677_v6 = vpop.f32.mrb[3].mxu1  ;;  %v709_v61 = vld [vmem:[%s2569_s14] sm:$0xff] }
 0x29c   :  { %v374_v8 = vadd.f32 %v373_v2, %v372_v62  ;;  %v382_v9 = vrot.slane %v381_v4, 4  ;;  %v710_v62 = vld [vmem:[%s2569_s14 + $0x8] sm:$0xff]  ;;  %s2089_s14 = smov 112  }
 0x29d   :  { %v573_v10 = vsel %vm187_vm1, %v570_v5, 0.0  ;;  %v581_v11 = vmul.f32 %v570_v5, %v570_v5  ;;  %v1759_v63 = vpack.c.bf16 %v710_v62, %v709_v61 }
 0x29e   :  { %v375_v12 = vrot.slane %v374_v8, 2  ;;  %v383_v13 = vadd.f32 %v382_v9, %v381_v4  ;;  %v574_v14 = vrot.slane %v573_v10, 4  ;;  %v1585_v4 = vld [vmem:[#allocation11] ss:$0 sm:$0xff] }
 0x29f   :  { %v582_v15 = vsel %vm187_vm1, %v581_v11, 0.0  ;;  %1760 = vmatpush3.bf16.msra.mxu1 %v1759_v63 }
 0x2a0   :  { %v376_v16 = vadd.f32 %v375_v12, %v374_v8  ;;  %v384_v17 = vrot.slane %v383_v13, 2  ;;  %v575_v18 = vadd.f32 %v574_v14, %v573_v10  ;;  %v583_v19 = vrot.slane %v582_v15, 4  ;;  %1696 = vmatprep.subr.mxu1 %v2088_v1 }
 0x2a2   :  { %v377_v20 = vrot.slane %v376_v16, 1  ;;  %v385_v21 = vadd.f32 %v384_v17, %v383_v13  ;;  %v576_v22 = vrot.slane %v575_v18, 2  ;;  %v584_v23 = vadd.f32 %v583_v19, %v582_v15 }
 0x2a4   :  { %v378_v24 = vadd.f32 %v377_v20, %v376_v16  ;;  %v386_v25 = vrot.slane %v385_v21, 1  ;;  %v577_v26 = vadd.f32 %v576_v22, %v575_v18  ;;  %v585_v27 = vrot.slane %v584_v23, 2 }
 0x2a6   :  { %v379_v28 = vmul.f32 0.125, %v378_v24  ;;  %v387_v29 = vadd.f32 %v386_v25, %v385_v21  ;;  %v578_v30 = vrot.slane %v577_v26, 1  ;;  %v586_v31 = vadd.f32 %v585_v27, %v584_v23 }
 0x2a8   :  { %v388_v32 = vmul.f32 0.125, %v387_v29  ;;  %v389_v33 = vmul.f32 %v379_v28, %v379_v28  ;;  %v579_v34 = vadd.f32 %v578_v30, %v577_v26  ;;  %v587_v35 = vrot.slane %v586_v31, 1 }
 0x2a9   :  { %v391_v45 = vsub.f32 %v368_v59, %v379_v28 }
 0x2aa   :  { %v390_v36 = vsub.f32 %v388_v32, %v389_v33  ;;  %v580_v37 = vmul.f32 0.125, %v579_v34  ;;  %v588_v38 = vadd.f32 %v587_v35, %v586_v31  ;;  %v1581_v34 = vld [vmem:[#allocation13] ss:$0 sm:$0xff]  ;;  %v1587_v35 = vld [vmem:[#allocation14] ss:$0 sm:$0xff] }
 0x2ac   :  { %v392_v39 = vadd.f32 1e-05, %v390_v36  ;;  %v590_v40 = vmul.f32 %v580_v37, %v580_v37  ;;  %v589_v42 = vmul.f32 0.125, %v588_v38  ;;  %v592_v52 = vsub.f32 %v570_v5, %v580_v37 }
 0x2ae   :  { %1808 = vrsqrt.f32 %v392_v39  ;;  %v591_v43 = vsub.f32 %v589_v42, %v590_v40 }
 0x2b0   :  { %v593_v44 = vadd.f32 1e-05, %v591_v43 }
 0x2b2   :  { %1810 = vrsqrt.f32 %v593_v44 }
 0x2b8   :  { %v1809_v46 = vpop.eup %1808 }
 0x2b9   :  { %v394_v49 = vmul.f32 %v1809_v46, %v391_v45 }
 0x2bb   :  { %vm395_vm4 = vcmp.ge.f32.partialorder %v394_v49, 0.0  ;;  %v396_v50 = vmul.f32 0.01, %v394_v49 }
 0x2bc   :  { %v1811_v55 = vpop.eup %1810 }
 0x2bd   :  { %v397_v56 = vsel %vm395_vm4, %v394_v49, %v396_v50  ;;  %v595_v57 = vmul.f32 %v1811_v55, %v592_v52  ;;  %v970_v49 = vshrl.u32 %v969_v48, 7 }
 0x2be   :  { %1669 = vmatmul.mubr.msk.f32.vlgmr.msra.gmra.mrb[2].mxu0 %vm371_vm3, %v397_v56 }
 0x2bf   :  { %1754 = vmatpush3.bf16.msra.mxu0 %v1753_v51  ;;  %1686 = vmatprep.mubr.msk.f32.mxu0 %vm2087_vm0, %v2088_v1  ;;  %v597_v59 = vmul.f32 0.01, %v595_v57  ;;  %vm596_vm5 = vcmp.ge.f32.partialorder %v595_v57, 0.0  ;;  %v971_v50 = vsub.s32 0, %v970_v49  ;;  %v1595_v49 = vld [vmem:[%s2577_s22 + $0x8] sm:$0xff] }
 0x2c0   :  { %1755 = vmatprep.subr.bf16.mxu0 %v2086_v0 }
 0x2c1   :  { %v598_v60 = vsel %vm596_vm5, %v595_v57, %v597_v59 }
 0x2c3   :  { %1757 = vmatpush3.bf16.msra.mxu0 %v1756_v58 }
 0x2c4   :  { %1701 = vmatprep.subr.mxu0 %v2088_v1 }
 0x2c6   :  { %1687 = vmatmul.mubr.msk.f32.vlgmr.msra.gmra.mrb[4].mxu0 %vm187_vm1, %v598_v60 }
 0x2c7   :  { %1703 = vmatprep.mubr.msk.f32.mxu0 %vm2087_vm0, %v2088_v1 }
 0x391   :  { %v476_v2 = vpop.f32.mrb[2].mxu0 }
 0x392   :  { %v1670_v3 = vpop.f32.mrb[3].mxu0  ;;  %v477_v36 = vadd.f32 %v1581_v34, %v476_v2  ;;  %v999_v2 = vrot.slane %v799_v54, %v971_v50 }
 0x394   :  { %v480_v40 = vsub.f32 0.0, %v477_v36 }
 0x396   :  { %v481_v44 = vmul.f32 1.442695, %v480_v40 }
 0x399   :  { %v679_v5 = vpop.f32.mrb[4].mxu0 }
 0x39a   :  { %v680_v6 = vadd.f32 %v1585_v4, %v679_v5  ;;  %v1688_v8 = vpop.f32.mrb[5].mxu0 }
 0x39c   :  { %v683_v9 = vsel %vm371_vm3, %v680_v6, 0.0  ;;  %v691_v10 = vmul.f32 %v680_v6, %v680_v6 }
 0x39d   :  { %v684_v11 = vrot.slane %v683_v9, 4 }
 0x39e   :  { %v692_v12 = vsel %vm371_vm3, %v691_v10, 0.0 }
 0x39f   :  { %v685_v13 = vadd.f32 %v684_v11, %v683_v9  ;;  %v693_v14 = vrot.slane %v692_v12, 4 }
 0x3a1   :  { %v686_v15 = vrot.slane %v685_v13, 2  ;;  %v694_v16 = vadd.f32 %v693_v14, %v692_v12 }
 0x3a3   :  { %v687_v17 = vadd.f32 %v686_v15, %v685_v13  ;;  %v695_v18 = vrot.slane %v694_v16, 2 }
 0x3a5   :  { %v688_v19 = vrot.slane %v687_v17, 1  ;;  %v696_v20 = vadd.f32 %v695_v18, %v694_v16 }
 0x3a7   :  { %v689_v21 = vadd.f32 %v688_v19, %v687_v17  ;;  %v697_v22 = vrot.slane %v696_v20, 1 }
 0x3a9   :  { %v690_v23 = vmul.f32 0.125, %v689_v21  ;;  %v698_v24 = vadd.f32 %v697_v22, %v696_v20 }
 0x3ab   :  { %v699_v25 = vmul.f32 0.125, %v698_v24  ;;  %v700_v26 = vmul.f32 %v690_v23, %v690_v23  ;;  %v702_v29 = vsub.f32 %v680_v6, %v690_v23 }
 0x3ad   :  { %v701_v27 = vsub.f32 %v699_v25, %v700_v26 }
 0x3af   :  { %v703_v28 = vadd.f32 1e-05, %v701_v27 }
 0x3b1   :  { %1812 = vrsqrt.f32 %v703_v28 }
 0x3bb   :  { %v1813_v30 = vpop.eup %1812 }
 0x3bc   :  { %v705_v31 = vmul.f32 %v1813_v30, %v702_v29 }
 0x3be   :  { %vm706_vm6 = vcmp.ge.f32.partialorder %v705_v31, 0.0  ;;  %v707_v32 = vmul.f32 0.01, %v705_v31 }
 0x3c0   :  { %v708_v33 = vsel %vm706_vm6, %v705_v31, %v707_v32  ;;  %v985_v32 = vld [vmem:[%s2577_s22] sm:$0xff] }
 0x3c1   :  { %1694 = vmatmul.mubr.msk.f32.vlgmr.msra.gmra.mrb[4].mxu1 %vm371_vm3, %v708_v33 }
 0x3c2   :  { %1698 = vmatprep.mubr.msk.f32.mxu1 %vm2087_vm0, %v2088_v1 }
 0x494   :  { %v787_v37 = vpop.f32.mrb[4].mxu1 }
 0x495   :  { %v788_v38 = vadd.f32 %v1587_v35, %v787_v37  ;;  %v1695_v39 = vpop.f32.mrb[5].mxu1 }
 0x497   :  { %v791_v42 = vsub.f32 0.0, %v788_v38 }
 0x499   :  { %v792_v43 = vmul.f32 1.442695, %v791_v42 }
 0x49b   :  { %1814 = vpow2.f32 %v792_v43 }
 0x49c   :  { %1816 = vpow2.f32 %v481_v44 }
 0x49d   :  { %1818 = vrcp.f32 %v800_v47 }
 0x4a5   :  { %v1815_v45 = vpop.eup %1814 }
 0x4a6   :  { %795 = vrot.lane.b32.xlu0 %v1815_v45, %s2089_s14  ;;  %v1817_v46 = vpop.eup %1816 }
 0x4a7   :  { %v1819_v51 = vpop.eup %1818 }
 0x4a8   :  { %v972_v52 = vrot.slane %v1819_v51, %v971_v50  ;;  %v805_v56 = vmul.f32 %v1819_v51, %v799_v54 }
 0x4aa   :  { %484 = vrot.lane.b32.xlu0 %v1817_v46, %s2089_s14  ;;  %v979_v60 = vrot.slane %v805_v56, %v971_v50 }
 0x518   :  { %v796_v53 = vpop.permute.xlu0 %795 }
 0x519   :  { %v974_v55 = vadd.f32 %v972_v52, %v796_v53  ;;  %v798_v61 = vmul.f32 %v796_v53, %v788_v38 }
 0x51b   :  { %1820 = vrcp.f32 %v974_v55  ;;  %v981_v63 = vadd.f32 %v979_v60, %v798_v61 }
 0x51c   :  { %v485_v57 = vpop.permute.xlu0 %484  ;;  %1822 = vlog2.f32 %v800_v47 }
 0x51d   :  { %v1145_v58 = vadd.f32 %v972_v52, %v485_v57  ;;  %v487_v62 = vmul.f32 %v485_v57, %v477_v36 }
 0x51f   :  { %1824 = vrcp.f32 %v1145_v58  ;;  %v1299_v59 = vadd.f32 %v1145_v58, %v796_v53  ;;  %v1146_v5 = vadd.f32 %v979_v60, %v487_v62  ;;  %v1598_v58 = vld [vmem:[%s2577_s22 + $0x10] sm:$0xff] }
 0x521   :  { %1826 = vrcp.f32 %v1299_v59  ;;  %v1300_v12 = vadd.f32 %v1146_v5, %v798_v61 }
 0x525   :  { %v1821_v3 = vpop.eup %1820 }
 0x526   :  { %v1823_v4 = vpop.eup %1822  ;;  %v984_v6 = vmul.f32 %v1821_v3, %v981_v63  ;;  %1828 = vrsqrt.f32 %v1821_v3  ;;  %v1002_v8 = vmul.f32 %v1821_v3, %v972_v52  ;;  %vm988_vm7 = vcmp.eq.f32.partialorder %v1821_v3, inf }
 0x527   :  { %1830 = vlog2.f32 %v1821_v3  ;;  %v804_v11 = vmul.f32 0.6931472, %v1823_v4  ;;  %v991_v31 = vand.u32 2147483648, %v1821_v3  ;;  %vm990_vm8 = vcmp.eq.f32.partialorder %v1821_v3, 0.0 }
 0x528   :  { %v1001_v9 = vsub.f32 %v999_v2, %v984_v6 }
 0x529   :  { %v1825_v10 = vpop.eup %1824  ;;  %v1011_v20 = vrot.slane %v804_v11, %v971_v50 }
 0x52a   :  { %v1003_v13 = vmul.f32 %v1001_v9, %v972_v52  ;;  %v2423_v14 = vmul.f32 %v1825_v10, %v1146_v5  ;;  %1832 = vrsqrt.f32 %v1825_v10  ;;  %v1162_v16 = vmul.f32 %v1825_v10, %v972_v52 }
 0x52b   :  { %v1827_v15 = vpop.eup %1826  ;;  %1834 = vlog2.f32 %v1825_v10  ;;  %vm1154_vm9 = vcmp.eq.f32.partialorder %v1825_v10, inf  ;;  %vm1156_vm10 = vcmp.eq.f32.partialorder %v1825_v10, 0.0  ;;  %v1157_v47 = vand.u32 2147483648, %v1825_v10 }
 0x52c   :  { %v1004_v17 = vmul.f32 %v1003_v13, %v1001_v9  ;;  %v1161_v18 = vsub.f32 %v999_v2, %v2423_v14  ;;  %v1303_v19 = vmul.f32 %v1827_v15, %v1300_v12  ;;  %1836 = vrsqrt.f32 %v1827_v15  ;;  %v888_v12 = vld [vmem:[%s2574_s19] sm:$0x3] }
 0x52d   :  { %v1316_v21 = vmul.f32 %v1827_v15, %v972_v52  ;;  %1838 = vlog2.f32 %v1827_v15  ;;  %vm1308_vm11 = vcmp.eq.f32.partialorder %v1827_v15, inf  ;;  %vm1310_vm12 = vcmp.eq.f32.partialorder %v1827_v15, 0.0  ;;  %v887_v13 = vld [vmem:[%s2603_s7] sm:$0xff]  ;;  %1702 = vmatpush3.msk.msra.mxu0 %vm893_vm13, %v888_v12 }
 0x52e   :  { %v1163_v22 = vmul.f32 %v1161_v18, %v972_v52  ;;  %v1315_v23 = vsub.f32 %v999_v2, %v1303_v19  ;;  %v1005_v24 = vadd.f32 %v1004_v17, %v1002_v8  ;;  %v1311_v59 = vand.u32 2147483648, %v1827_v15  ;;  %1704 = vmatmul.mubr.msk.f32.vlgmr.msra.gmra.mrb[6].mxu0 %vm889_vm14, %v887_v13  ;;  %1764 = vmatprep.subr.bf16.mxu0 %v2086_v0 }
 0x52f   :  { %1717 = vmatprep.mubr.msk.f32.mxu0 %vm2087_vm0, %v2088_v1 }
 0x530   :  { %v1829_v25 = vpop.eup %1828  ;;  %v1164_v26 = vmul.f32 %v1163_v22, %v1161_v18  ;;  %v1317_v27 = vmul.f32 %v1315_v23, %v972_v52  ;;  %v1593_v28 = vadd.f32 -16.0, %v1005_v24 }
 0x531   :  { %v1831_v29 = vpop.eup %1830  ;;  %v987_v30 = vmul.f32 %v1829_v25, %v1821_v3 }
 0x532   :  { %v1318_v33 = vmul.f32 %v1317_v27, %v1315_v23  ;;  %v2429_v34 = vadd.f32 %v1593_v28, %v1011_v20  ;;  %v2431_v35 = vmul.f32 0.6931472, %v1831_v29  ;;  %v1165_v36 = vadd.f32 %v1164_v26, %v1162_v16 }
 0x533   :  { %v989_v37 = vsel %vm988_vm7, %v1821_v3, %v987_v30 }
 0x534   :  { %v1833_v38 = vpop.eup %1832  ;;  %v992_v39 = vsel %vm990_vm8, %v991_v31, %v989_v37  ;;  %v1016_v40 = vsub.f32 %v2429_v34, %v2431_v35  ;;  %v1596_v42 = vadd.f32 -16.0, %v1165_v36  ;;  %v1319_v43 = vadd.f32 %v1318_v33, %v1316_v21  ;;  %v1194_v31 = vld [vmem:[%s2571_s16] sm:$0xff]  ;;  %v1041_v37 = vld [vmem:[%s2572_s17 + $0x8] sm:$0xff] }
 0x535   :  { %v1835_v44 = vpop.eup %1834  ;;  %v993_v45 = vmul.f32 %v992_v39, %v985_v32  ;;  %v1153_v46 = vmul.f32 %v1833_v38, %v1825_v10  ;;  %v1195_v32 = vld [vmem:[%s2571_s16 + $0x8] sm:$0xff]  ;;  %v1040_v36 = vld [vmem:[%s2572_s17] sm:$0xff]  ;;  %s2090_s16 = smov 96  }
 0x536   :  { %v1837_v48 = vpop.eup %1836  ;;  %v2438_v50 = vadd.f32 %v1596_v42, %v1011_v20  ;;  %v2440_v51 = vmul.f32 0.6931472, %v1835_v44  ;;  %v1599_v52 = vadd.f32 -16.0, %v1319_v43  ;;  %v1765_v33 = vpack.c.bf16 %v1195_v32, %v1194_v31 }
 0x537   :  { %v994_v53 = vadd.f32 %v993_v45, %v984_v6  ;;  %v1155_v54 = vsel %vm1154_vm9, %v1825_v10, %v1153_v46  ;;  %v1307_v55 = vmul.f32 %v1837_v48, %v1827_v15  ;;  %v1839_v56 = vpop.eup %1838  ;;  %v1762_v38 = vpack.c.bf16 %v1041_v37, %v1040_v36 }
 0x538   :  { %v1158_v57 = vsel %vm1156_vm10, %v1157_v47, %v1155_v54  ;;  %v1170_v60 = vsub.f32 %v2438_v50, %v2440_v51  ;;  %v2448_v61 = vadd.f32 %v1599_v52, %v1011_v20  ;;  %v2452_v3 = vmul.f32 0.6931472, %v1839_v56  ;;  %1766 = vmatpush3.bf16.msra.mxu0 %v1765_v33 }
 0x539   :  { %v1029_v62 = vsel %vm371_vm3, %v994_v53, -inf  ;;  %v1159_v63 = vmul.f32 %v1595_v49, %v1158_v57  ;;  %v1309_v2 = vsel %vm1308_vm11, %v1827_v15, %v1307_v55  ;;  %v806_v15 = vld [vmem:[%s2604_s4] sm:$0xff]  ;;  %1770 = vmatprep.subr.bf16.mxu0 %v2086_v0 }
 0x53a   :  { %1030 = vmax.xlane.f32.xlu1 %v1029_v62  ;;  %v1312_v4 = vsel %vm1310_vm12, %v1311_v59, %v1309_v2  ;;  %v1324_v8 = vsub.f32 %v2448_v61, %v2452_v3 }
 0x53b   :  { %v1160_v5 = vadd.f32 %v1159_v63, %v2423_v14  ;;  %v1313_v6 = vmul.f32 %v1598_v58, %v1312_v4  ;;  %v807_v14 = vld [vmem:[%s2573_s18] sm:$0xf] }
 0x53c   :  { %1697 = vmatpush3.msk.msra.mxu1 %vm812_vm15, %v807_v14 }
 0x53d   :  { %v1183_v9 = vsel %vm371_vm3, %v1160_v5, -inf  ;;  %v1314_v10 = vadd.f32 %v1313_v6, %v1303_v19  ;;  %1699 = vmatmul.mubr.msk.f32.vlgmr.msra.gmra.mrb[6].mxu1 %vm808_vm2, %v806_v15  ;;  %1761 = vmatprep.subr.bf16.mxu1 %v2086_v0 }
 0x53e   :  { %1184 = vmax.xlane.f32.xlu1 %v1183_v9  ;;  %1710 = vmatprep.mubr.msk.f32.mxu1 %vm2087_vm0, %v2088_v1 }
 0x53f   :  { %v1337_v11 = vsel %vm371_vm3, %v1314_v10, -inf  ;;  %1763 = vmatpush3.bf16.msra.mxu1 %v1762_v38 }
 0x540   :  { %1338 = vmax.xlane.f32.xlu0 %v1337_v11  ;;  %1767 = vmatprep.subr.bf16.mxu1 %v2086_v0 }
 0x5c7   :  { %v1031_v16 = vpop.xlane.xlu1 %1030 }
 0x5c8   :  { %v1032_v17 = vsub.f32 %v994_v53, %v1031_v16 }
 0x5ca   :  { %v1033_v21 = vmul.f32 1.442695, %v1032_v17 }
 0x5cb   :  { %v1185_v18 = vpop.xlane.xlu1 %1184 }
 0x5cc   :  { %v1186_v19 = vsub.f32 %v1160_v5, %v1185_v18 }
 0x5cd   :  { %v1339_v20 = vpop.xlane.xlu0 %1338 }
 0x5ce   :  { %v1187_v22 = vmul.f32 1.442695, %v1186_v19  ;;  %v1340_v23 = vsub.f32 %v1314_v10, %v1339_v20 }
 0x5d0   :  { %1840 = vpow2.f32 %v1187_v22  ;;  %v1341_v24 = vmul.f32 1.442695, %v1340_v23 }
 0x5d1   :  { %1842 = vpow2.f32 %v1033_v21 }
 0x5d2   :  { %1844 = vpow2.f32 %v1341_v24 }
 0x5da   :  { %v1841_v25 = vpop.eup %1840 }
 0x5db   :  { %v1189_v26 = vsel %vm371_vm3, %v1841_v25, 0.0  ;;  %v1843_v27 = vpop.eup %1842 }
 0x5dc   :  { %1190 = vadd.xlane.f32.xlu1 %v1189_v26  ;;  %v1035_v28 = vsel %vm371_vm3, %v1843_v27, 0.0  ;;  %v1845_v29 = vpop.eup %1844 }
 0x5dd   :  { %v1343_v30 = vsel %vm371_vm3, %v1845_v29, 0.0 }
 0x5e0   :  { %1036 = vadd.xlane.f32.xlu1 %v1035_v28 }
 0x5e4   :  { %1344 = vadd.xlane.f32.xlu1 %v1343_v30 }
 0x601   :  { %v963_v39 = vpop.f32.mrb[6].mxu0 }
 0x602   :  { %v1705_v42 = vpop.f32.mrb[7].mxu0  ;;  %1117 = vrot.lane.b32.xlu1 %v963_v39, %s2089_s14  ;;  %v967_v63 = vadd.f32 1.0, %v963_v39 }
 0x610   :  { %v882_v43 = vpop.f32.mrb[6].mxu1 }
 0x611   :  { %v1700_v44 = vpop.f32.mrb[7].mxu1  ;;  %1271 = vrot.lane.b32.xlu1 %v882_v43, %s2090_s16  ;;  %v886_v56 = vadd.f32 1.0, %v882_v43 }
 0x669   :  { %v1191_v45 = vpop.xlane.xlu1 %1190 }
 0x66a   :  { %1846 = vrcp.f32 %v1191_v45  ;;  %v1017_v45 = vsel %vm371_vm3, %v1016_v40, 0.0 }
 0x66d   :  { %v1037_v46 = vpop.xlane.xlu1 %1036 }
 0x66e   :  { %1848 = vrcp.f32 %v1037_v46  ;;  %v1171_v46 = vsel %vm371_vm3, %v1170_v60, 0.0 }
 0x671   :  { %v1345_v47 = vpop.xlane.xlu1 %1344 }
 0x672   :  { %1850 = vrcp.f32 %v1345_v47 }
 0x674   :  { %v1847_v48 = vpop.eup %1846 }
 0x675   :  { %v1193_v49 = vmul.f32 %v1847_v48, %v1841_v25  ;;  %v1118_v55 = vpop.permute.xlu1 %1117 }
 0x677   :  { %1718 = vmatmul.mubr.msk.f32.vlgmr.msra.gmra.mrb[8].mxu0 %vm371_vm3, %v1193_v49 }
 0x678   :  { %v1849_v52 = vpop.eup %1848  ;;  %1772 = vmatpush3.bf16.msra.mxu0 %v1762_v38  ;;  %1731 = vmatprep.mubr.msk.f32.mxu0 %vm2087_vm0, %v2088_v1 }
 0x679   :  { %v1039_v0 = vmul.f32 %v1849_v52, %v1843_v27 }
 0x67b   :  { %1711 = vmatmul.mubr.msk.f32.vlgmr.msra.gmra.mrb[8].mxu1 %vm371_vm3, %v1039_v0 }
 0x67c   :  { %v1851_v53 = vpop.eup %1850  ;;  %1769 = vmatpush3.bf16.msra.mxu1 %v1765_v33  ;;  %1724 = vmatprep.mubr.msk.f32.mxu1 %vm2087_vm0, %v2088_v1 }
 0x67d   :  { %v1347_v54 = vmul.f32 %v1851_v53, %v1845_v29 }
 0x67f   :  { %1725 = vmatmul.mubr.msk.f32.vlgmr.msra.gmra.mrb[10].mxu1 %vm371_vm3, %v1347_v54  ;;  %1732 = vmatmul.mubr.msk.f32.vlgmr.msra.gmra.mrb[10].mxu0 %vm371_vm3, %v1347_v54 }
 0x683   :  { %v1272_v58 = vpop.permute.xlu1 %1271 }
 0x74a   :  { %v1265_v57 = vpop.f32.mrb[8].mxu0 }
 0x74b   :  { %v1269_v59 = vmul.f32 %v1265_v57, %v886_v56  ;;  %v1719_v62 = vpop.f32.mrb[9].mxu0 }
 0x74d   :  { %v1274_v2 = vadd.f32 %v1272_v58, %v1269_v59 }
 0x74e   :  { %v1111_v4 = vpop.f32.mrb[8].mxu1 }
 0x74f   :  { %v1115_v5 = vmul.f32 %v1111_v4, %v967_v63  ;;  %v1712_v6 = vpop.f32.mrb[9].mxu1  ;;  %v1275_v9 = vsel %vm187_vm1, %v1274_v2, -inf }
 0x750   :  { %1276 = vmax.xlane.f32.xlu1 %v1275_v9 }
 0x751   :  { %v1120_v1 = vadd.f32 %v1118_v55, %v1115_v5 }
 0x752   :  { %v1417_v10 = vpop.f32.mrb[10].mxu1  ;;  %v1513_v11 = vpop.f32.mrb[10].mxu0 }
 0x753   :  { %v1421_v12 = vmul.f32 %v1417_v10, %v886_v56  ;;  %v1517_v13 = vmul.f32 %v1513_v11, %v967_v63  ;;  %v1726_v14 = vpop.f32.mrb[11].mxu1  ;;  %v1733_v15 = vpop.f32.mrb[11].mxu0  ;;  %v1121_v16 = vsel %vm371_vm3, %v1120_v1, -inf  ;;  %v1325_v10 = vsel %vm371_vm3, %v1324_v8, 0.0 }
 0x754   :  { %1122 = vmax.xlane.f32.xlu0 %v1121_v16 }
 0x755   :  { %v1422_v17 = vadd.f32 %v1421_v12, %v1272_v58  ;;  %v1518_v19 = vadd.f32 %v1517_v13, %v1118_v55 }
 0x757   :  { %v1423_v18 = vsel %vm187_vm1, %v1422_v17, -inf  ;;  %v1519_v20 = vsel %vm371_vm3, %v1518_v19, -inf }
 0x758   :  { %1424 = vmax.xlane.f32.xlu0 %v1423_v18 }
 0x75c   :  { %1520 = vmax.xlane.f32.xlu0 %v1519_v20 }
 0x7dd   :  { %v1277_v21 = vpop.xlane.xlu1 %1276 }
 0x7de   :  { %v1278_v22 = vsub.f32 %v1274_v2, %v1277_v21 }
 0x7e0   :  { %v1279_v23 = vmul.f32 1.442695, %v1278_v22 }
 0x7e1   :  { %v1123_v24 = vpop.xlane.xlu0 %1122 }
 0x7e2   :  { %1852 = vpow2.f32 %v1279_v23  ;;  %v1124_v25 = vsub.f32 %v1120_v1, %v1123_v24 }
 0x7e4   :  { %v1125_v26 = vmul.f32 1.442695, %v1124_v25 }
 0x7e5   :  { %v1425_v27 = vpop.xlane.xlu0 %1424 }
 0x7e6   :  { %1854 = vpow2.f32 %v1125_v26  ;;  %v1426_v28 = vsub.f32 %v1422_v17, %v1425_v27 }
 0x7e8   :  { %v1427_v29 = vmul.f32 1.442695, %v1426_v28 }
 0x7e9   :  { %v1521_v30 = vpop.xlane.xlu0 %1520 }
 0x7ea   :  { %1856 = vpow2.f32 %v1427_v29  ;;  %v1522_v31 = vsub.f32 %v1518_v19, %v1521_v30 }
 0x7ec   :  { %v1853_v32 = vpop.eup %1852  ;;  %v1523_v33 = vmul.f32 1.442695, %v1522_v31 }
 0x7ed   :  { %v1281_v36 = vsel %vm187_vm1, %v1853_v32, 0.0 }
 0x7ee   :  { %1858 = vpow2.f32 %v1523_v33  ;;  %1282 = vadd.xlane.f32.xlu0 %v1281_v36 }
 0x7f0   :  { %v1855_v37 = vpop.eup %1854 }
 0x7f1   :  { %v1127_v38 = vsel %vm371_vm3, %v1855_v37, 0.0 }
 0x7f2   :  { %1128 = vadd.xlane.f32.xlu0 %v1127_v38 }
 0x7f4   :  { %v1857_v39 = vpop.eup %1856 }
 0x7f5   :  { %v1429_v42 = vsel %vm187_vm1, %v1857_v39, 0.0 }
 0x7f6   :  { %1430 = vadd.xlane.f32.xlu0 %v1429_v42 }
 0x7f8   :  { %v1859_v43 = vpop.eup %1858 }
 0x7f9   :  { %v1525_v44 = vsel %vm371_vm3, %v1859_v43, 0.0 }
 0x7fa   :  { %1526 = vadd.xlane.f32.xlu0 %v1525_v44 }
 0x7fe   :  { %1018 = vadd.xlane.f32.xlu0 %v1017_v45 }
 0x802   :  { %1172 = vadd.xlane.f32.xlu0 %v1171_v46 }
 0x87b   :  { %v1283_v47 = vpop.xlane.xlu0 %1282 }
 0x87c   :  { %1860 = vlog2.f32 %v1283_v47 }
 0x87f   :  { %v1129_v48 = vpop.xlane.xlu0 %1128 }
 0x880   :  { %1862 = vlog2.f32 %v1129_v48 }
 0x883   :  { %v1431_v49 = vpop.xlane.xlu0 %1430 }
 0x884   :  { %1864 = vlog2.f32 %v1431_v49 }
 0x886   :  { %v1861_v52 = vpop.eup %1860 }
 0x887   :  { %v1285_v0 = vmul.f32 0.6931472, %v1861_v52  ;;  %v1527_v53 = vpop.xlane.xlu0 %1526 }
 0x888   :  { %1866 = vlog2.f32 %v1527_v53 }
 0x889   :  { %v1286_v34 = vsub.f32 %v1278_v22, %v1285_v0 }
 0x88a   :  { %v1863_v35 = vpop.eup %1862 }
 0x88b   :  { %v1131_v40 = vmul.f32 0.6931472, %v1863_v35  ;;  %v1019_v54 = vpop.xlane.xlu0 %1018  ;;  %v1287_v55 = vmul.f32 %v1286_v34, %v2332_v7 }
 0x88c   :  { %v1020_v50 = vrot.slane %v1019_v54, 4 }
 0x88d   :  { %v1288_v51 = vsel %vm187_vm1, %v1287_v55, 0.0  ;;  %v1132_v60 = vsub.f32 %v1124_v25, %v1131_v40 }
 0x88e   :  { %v1865_v56 = vpop.eup %1864  ;;  %v1021_v57 = vadd.f32 %v1020_v50, %v1019_v54  ;;  %1289 = vadd.xlane.f32.xlu1 %v1288_v51 }
 0x88f   :  { %v1433_v58 = vmul.f32 0.6931472, %v1865_v56  ;;  %v1133_v59 = vmul.f32 %v1132_v60, %v2356_v41  ;;  %v1173_v16 = vpop.xlane.xlu0 %1172 }
 0x890   :  { %v1022_v62 = vrot.slane %v1021_v57, 2 }
 0x891   :  { %v1134_v63 = vsel %vm371_vm3, %v1133_v59, 0.0  ;;  %v1434_v2 = vsub.f32 %v1426_v28, %v1433_v58 }
 0x892   :  { %v1867_v4 = vpop.eup %1866  ;;  %1135 = vadd.xlane.f32.xlu0 %v1134_v63  ;;  %v1023_v5 = vadd.f32 %v1022_v62, %v1021_v57 }
 0x893   :  { %v1529_v6 = vmul.f32 0.6931472, %v1867_v4  ;;  %v1435_v9 = vmul.f32 %v1434_v2, %v2332_v7  ;;  %v1174_v7 = vrot.slane %v1173_v16, 4 }
 0x894   :  { %v1024_v1 = vrot.slane %v1023_v5, 1 }
 0x895   :  { %v1436_v11 = vsel %vm187_vm1, %v1435_v9, 0.0  ;;  %v1530_v12 = vsub.f32 %v1522_v31, %v1529_v6  ;;  %v1175_v17 = vadd.f32 %v1174_v7, %v1173_v16 }
 0x896   :  { %1326 = vadd.xlane.f32.xlu0 %v1325_v10  ;;  %1437 = vadd.xlane.f32.xlu1 %v1436_v11  ;;  %v1025_v13 = vadd.f32 %v1024_v1, %v1023_v5 }
 0x897   :  { %v1531_v14 = vmul.f32 %v1530_v12, %v2356_v41  ;;  %v1176_v3 = vrot.slane %v1175_v17, 2 }
 0x898   :  { %1773 = vpush %v1025_v13 }
 0x899   :  { %v1532_v15 = vsel %vm371_vm3, %v1531_v14, 0.0  ;;  %v1177_v25 = vadd.f32 %v1176_v3, %v1175_v17 }
 0x89a   :  { %1533 = vadd.xlane.f32.xlu0 %v1532_v15 }
 0x89b   :  { %v1178_v33 = vrot.slane %v1177_v25, 1 }
 0x89d   :  { %v1179_v47 = vadd.f32 %v1178_v33, %v1177_v25 }
 0x8c9   :  { %s1774_s17 = spop %1773 }
 0x8ca   :  { %s1027_s14 = smul.f32 0.5, %s1774_s17 }
 0x91b   :  { %v1290_v18 = vpop.xlane.xlu1 %1289 }
 0x91c   :  { %v1291_v19 = vrot.slane %v1290_v18, 4 }
 0x91e   :  { %v1292_v61 = vadd.f32 %v1291_v19, %v1290_v18 }
 0x91f   :  { %v1136_v8 = vpop.xlane.xlu0 %1135 }
 0x920   :  { %v1293_v20 = vrot.slane %v1292_v61, 2  ;;  %v1137_v21 = vrot.slane %v1136_v8, 4 }
 0x922   :  { %v1138_v22 = vadd.f32 %v1137_v21, %v1136_v8  ;;  %v1294_v26 = vadd.f32 %v1293_v20, %v1292_v61 }
 0x923   :  { %v1438_v23 = vpop.xlane.xlu1 %1437  ;;  %v1327_v24 = vpop.xlane.xlu0 %1326 }
 0x924   :  { %v1139_v41 = vrot.slane %v1138_v22, 2  ;;  %v1439_v27 = vrot.slane %v1438_v23, 4  ;;  %v1328_v28 = vrot.slane %v1327_v24, 4  ;;  %v1295_v36 = vrot.slane %v1294_v26, 1 }
 0x926   :  { %v1440_v29 = vadd.f32 %v1439_v27, %v1438_v23  ;;  %v1329_v30 = vadd.f32 %v1328_v28, %v1327_v24  ;;  %v1140_v31 = vadd.f32 %v1139_v41, %v1138_v22  ;;  %v1296_v49 = vadd.f32 %v1295_v36, %v1294_v26 }
 0x927   :  { %v1534_v32 = vpop.xlane.xlu0 %1533 }
 0x928   :  { %v1441_v37 = vrot.slane %v1440_v29, 2  ;;  %v1330_v38 = vrot.slane %v1329_v30, 2  ;;  %v1535_v39 = vrot.slane %v1534_v32, 4  ;;  %v1141_v42 = vrot.slane %v1140_v31, 1 }
 0x92a   :  { %v1442_v43 = vadd.f32 %v1441_v37, %v1440_v29  ;;  %v1536_v44 = vadd.f32 %v1535_v39, %v1534_v32  ;;  %v1142_v45 = vadd.f32 %v1141_v42, %v1140_v31  ;;  %v1331_v46 = vadd.f32 %v1330_v38, %v1329_v30 }
 0x92c   :  { %v1537_v48 = vrot.slane %v1536_v44, 2  ;;  %1775 = vpush %v1142_v45  ;;  %v1332_v52 = vrot.slane %v1331_v46, 1  ;;  %v1443_v0 = vrot.slane %v1442_v43, 1 }
 0x92d   :  { %1777 = vpush %v1179_v47 }
 0x92e   :  { %v1538_v53 = vadd.f32 %v1537_v48, %v1536_v44  ;;  %1779 = vpush %v1296_v49  ;;  %v1333_v34 = vadd.f32 %v1332_v52, %v1331_v46  ;;  %v1444_v35 = vadd.f32 %v1443_v0, %v1442_v43 }
 0x930   :  { %1781 = vpush %v1333_v34  ;;  %v1539_v40 = vrot.slane %v1538_v53, 1 }
 0x931   :  { %1783 = vpush %v1444_v35 }
 0x932   :  { %v1540_v54 = vadd.f32 %v1539_v40, %v1538_v53 }
 0x934   :  { %1785 = vpush %v1540_v54 }
 0x95d   :  { %s1776_s1 = spop %1775 }
 0x95e   :  { %s1144_s30 = ssub.f32 0.0, %s1776_s1  ;;  %s1778_s20 = spop %1777 }
 0x95f   :  { %s1181_s21 = smul.f32 0.5, %s1778_s20  ;;  %s1780_s3 = spop %1779 }
 0x960   :  { %s1298_s9 = ssub.f32 %s1144_s30, %s1780_s3 }
 0x961   :  { %s1182_s29 = sadd.f32 %s1181_s21, %s1027_s14  ;;  %s1782_s25 = spop %1781 }
 0x962   :  { %s1335_s22 = smul.f32 0.5, %s1782_s25  ;;  %s1784_s8 = spop %1783 }
 0x963   :  { %s1446_s12 = ssub.f32 %s1298_s9, %s1784_s8 }
 0x964   :  { %s1336_s6 = sadd.f32 %s1335_s22, %s1182_s29 }
 0x965   :  { %s1786_s7 = spop %1785 }
 0x966   :  { %s1542_s27 = ssub.f32 %s1446_s12, %s1786_s7 }
 0x967   :  { %1544 = sst [smem:[#allocation16]] %s1336_s6 }
 0x968   :  { %2053 = shalt.err (!%p2050_p10)
}
 0x969   :  { %s2091_s5 = smov [#allocation16]   ;;  %1546 = sst [smem:[#allocation17]] %s1542_s27 }
 0x96a   :  { %1554 = dma.smem_to_hbm %s2091_s5, 16, %s2578_s23, [#allocation4]  }
 0x96b   :  { %s2054_s16 = scalar_lea.hbm %s2579_s24, 16 }
 0x96c   :  { %p2055_p11 = scmp.ne.s32.totalorder %s2579_s24, %s2054_s16  ;;  %p2058_p12 = scmp.lt.u32.totalorder %s2054_s16, %s2579_s24 }
 0x96e   :  { %p2060_p13 = pnand %p2058_p12, %p2055_p11 }
 0x970   :  { %2063 = shalt.err (!%p2060_p13)
}
 0x971   :  { %s2092_s20 = smov [#allocation17]  }
 0x972   :  { %1562 = dma.smem_to_hbm %s2092_s20, 16, %s2579_s24, [#allocation18]  }
 0x973   :  { %2074 = dma.done.wait [#allocation4], 16  }
 0x974   :  { %2075 = vsyncadd [#allocation4], 4294967280 }
 0x975   :  { %2076 = dma.done.wait [#allocation18], 16  }
 0x976   :  { %2077 = vsyncadd [#allocation18], 4294967280 }
 0x977   :  { %1569 = sfence }
 0x978   :  { %1570 = vsyncpa [#allocation3], 1 }
 0x979   :  { %1571 = vsyncpa [#allocation6], 1 }
 0x97a   :  { %1572 = vsyncpa [#allocation9], 1 }
 0x97b   :  { %1573 = vsyncpa [#allocation12], 1 }
 0x97c   :  { %1574 = vsyncpa [#allocation15], 1 }
 0x97d   :  { %1575 = vsyncpa [#allocation4], 1 }
 0x97e   :  { %1576 = vsyncpa [#allocation18], 1 }

</bundles_post_ra>
